<compile_context>
chip_gen: v7x
topology: tpu7x:2x2x1
jax: 0.10.0
libtpu: 0.0.40
codegen_flags: <defaults>
</compile_context>

<pallas_src>
import functools
import math

import numpy as np
import jax
import jax.numpy as jnp
from jax import lax
from jax.experimental import pallas as pl
from jax.experimental.pallas import tpu as pltpu

# ----------------------------- config (small) -------------------------------
BATCH = 2
SEQ = 8                  # input_len
HIDDEN = 32              # hidden_size
NUM_HEADS = 4
NUM_KV_HEADS = 2
QPKV = NUM_HEADS // NUM_KV_HEADS
HEAD_DIM = 16
HALF_DIM = HEAD_DIM // 2
INTERMEDIATE = 64
CACHE_LEN = 8            # kv cache length (== SEQ here)
RMS_EPS = 1e-6
NEG_INF = -1e9

Q_SIZE = NUM_HEADS * HEAD_DIM          # 64
KV_SIZE = NUM_KV_HEADS * HEAD_DIM      # 32
QKV_SIZE = Q_SIZE + 2 * KV_SIZE        # 128  (exactly lane-dense)

_FL = (((1,), (1,)), ((), ()))   # x[M,K] . y[N,K]^T -> [M,N]
_MM = (((1,), (0,)), ((), ()))   # x[M,K] . y[K,N]   -> [M,N]


# ----------------------------- fused Pallas kernel ---------------------------
def _decoder_layer_kernel(x_ref, cosq_ref, sinq_ref, idx_ref, mask_ref,
                          kc_ref, vc_ref, wqkv_ref, wo_ref, wg_ref, wu_ref,
                          wd_ref, ln1_ref, ln2_ref,
                          out_ref, kc_out_ref, vc_out_ref,
                          *, scaling, eps):
    f32 = jnp.float32
    bf16 = jnp.bfloat16

    x = x_ref[0]                                       # (S, H) f32
    S = x.shape[0]

    # ---- input RMSNorm (Gemma: scale by (1 + weight)) ----
    var = jnp.mean(x * x, axis=-1, keepdims=True)
    h_ln = x * lax.rsqrt(var + eps) * (1.0 + ln1_ref[...])

    # ---- ONE fused, lane-dense QKV projection (bf16 in, f32 accumulate) ----
    qkv = lax.dot_general(h_ln.astype(bf16), wqkv_ref[...], _MM,
                          preferred_element_type=f32)   # (S, 128)

    cos_q = cosq_ref[...]                               # (S, NUM_HEADS*HALF)
    sin_q = sinq_ref[...]
    cos_k = cos_q[:, :NUM_KV_HEADS * HALF_DIM]
    sin_k = sin_q[:, :NUM_KV_HEADS * HALF_DIM]

    # Wrapper permuted the weight rows to: [Q 1st halves | Q 2nd halves |
    # K 1st halves | K 2nd halves | V], so RoPE is 4 full-width VPU ops.
    half_q = Q_SIZE // 2
    qa = qkv[:, :half_q]
    qb = qkv[:, half_q:Q_SIZE]
    ka = qkv[:, Q_SIZE:Q_SIZE + KV_SIZE // 2]
    kb = qkv[:, Q_SIZE + KV_SIZE // 2:Q_SIZE + KV_SIZE]
    xv = qkv[:, Q_SIZE + KV_SIZE:]                      # (S, KV_SIZE)

    rqa = qa * cos_q - qb * sin_q
    rqb = qa * sin_q + qb * cos_q
    rka = ka * cos_k - kb * sin_k
    rkb = ka * sin_k + kb * cos_k

    def assemble(first, second, n):
        # back to per-head-contiguous [rot-1st-half | rot-2nd-half] layout
        parts = []
        for i in range(n):
            parts.append(first[:, i * HALF_DIM:(i + 1) * HALF_DIM])
            parts.append(second[:, i * HALF_DIM:(i + 1) * HALF_DIM])
        return jnp.concatenate(parts, axis=-1)

    q_rot = assemble(rqa, rqb, NUM_HEADS) * scaling      # (S, NUM_HEADS*D)
    k_rot = assemble(rka, rkb, NUM_KV_HEADS)             # (S, KV_SIZE)

    # ---- KV-cache index_copy_: last-write-wins dynamic row update via SMEM
    #      indices, then ONE lane-dense (T, KV_SIZE) store per cache. ----
    new_kv = jnp.concatenate([k_rot, xv], axis=-1)                       # (S, 2*KV)
    cache = jnp.concatenate([kc_ref[0].astype(f32),
                             vc_ref[0].astype(f32)], axis=-1)            # (T, 2*KV)
    T = cache.shape[0]
    t_iota = lax.broadcasted_iota(jnp.int32, (T, 1), 0)
    for s in range(S):
        cache = jnp.where(t_iota == idx_ref[s], new_kv[s:s + 1, :], cache)
    kc_out_ref[0] = cache[:, :KV_SIZE].astype(kc_out_ref.dtype)
    vc_out_ref[0] = cache[:, KV_SIZE:].astype(vc_out_ref.dtype)

    mask = mask_ref[0]                                   # (S, T)
    mask_g = jnp.concatenate([mask] * QPKV, axis=0)      # (QPKV*S, T)

    # ---- GQA attention: QPKV query heads stacked along M per KV group ----
    o_heads = []
    for g in range(NUM_KV_HEADS):
        k_g = cache[:, g * HEAD_DIM:(g + 1) * HEAD_DIM].astype(bf16)               # (T, D)
        v_g = cache[:, KV_SIZE + g * HEAD_DIM:KV_SIZE + (g + 1) * HEAD_DIM].astype(bf16)
        q_g = jnp.concatenate(
            [q_rot[:, h * HEAD_DIM:(h + 1) * HEAD_DIM]
             for h in range(g * QPKV, (g + 1) * QPKV)], axis=0).astype(bf16)       # (QPKV*S, D)

        s_g = lax.dot_general(q_g, k_g, _FL, preferred_element_type=f32) + mask_g  # (QPKV*S, T)
        s_g = s_g - jnp.max(s_g, axis=-1, keepdims=True)
        p = jnp.exp(s_g)
        p = p * pl.reciprocal(jnp.sum(p, axis=-1, keepdims=True), approx=True)
        o_g = lax.dot_general(p.astype(bf16), v_g, _MM,
                              preferred_element_type=f32)                          # (QPKV*S, D)
        for j in range(QPKV):
            o_heads.append(o_g[j * S:(j + 1) * S, :])

    # ---- fused o-projection over all heads at once ----
    o_all = jnp.concatenate(o_heads, axis=-1)            # (S, NUM_HEADS*D)
    attn = lax.dot_general(o_all.astype(bf16), wo_ref[...], _MM,
                           preferred_element_type=f32)   # (S, H)

    # ---- residual + post-attention RMSNorm + MLP + residual ----
    h1 = x + attn
    var2 = jnp.mean(h1 * h1, axis=-1, keepdims=True)
    h2 = (h1 * lax.rsqrt(var2 + eps) * (1.0 + ln2_ref[...])).astype(bf16)
    gate = lax.dot_general(h2, wg_ref[...], _MM, preferred_element_type=f32)
    gate = 0.5 * gate * (1.0 + lax.erf(gate * (1.0 / math.sqrt(2.0))))   # exact GELU
    up = lax.dot_general(h2, wu_ref[...], _MM, preferred_element_type=f32)
    mlp = lax.dot_general((gate * up).astype(bf16), wd_ref[...], _MM,
                          preferred_element_type=f32)
    out_ref[0] = (h1 + mlp).astype(out_ref.dtype)


# ------------------------------ wrapper --------------------------------------
def _qkv_row_permutation():
    """qkv_proj output rows -> [Q 1st halves | Q 2nd halves | K 1st | K 2nd | V]."""
    idx = []
    for h in range(NUM_HEADS):
        idx.extend(range(h * HEAD_DIM, h * HEAD_DIM + HALF_DIM))
    for h in range(NUM_HEADS):
        idx.extend(range(h * HEAD_DIM + HALF_DIM, (h + 1) * HEAD_DIM))
    for g in range(NUM_KV_HEADS):
        base = Q_SIZE + g * HEAD_DIM
        idx.extend(range(base, base + HALF_DIM))
    for g in range(NUM_KV_HEADS):
        base = Q_SIZE + g * HEAD_DIM
        idx.extend(range(base + HALF_DIM, base + HEAD_DIM))
    idx.extend(range(Q_SIZE + KV_SIZE, QKV_SIZE))
    return np.asarray(idx, dtype=np.int32)


def gemma_decoder_layer(hidden_states, cos, sin, kv_write_indices,
                        k_cache, v_cache, mask, params):
    """Fused Pallas GemmaDecoderLayer. Returns (hidden_out, k_cache, v_cache)."""
    B, S, H = hidden_states.shape
    T = k_cache.shape[1]
    scaling = HEAD_DIM ** (-0.5)

    # RoPE tables tiled once to full multi-head width (vectorized in-kernel RoPE).
    cos_q = jnp.tile(cos, (1, NUM_HEADS)).astype(jnp.float32)    # (S, NUM_HEADS*HALF)
    sin_q = jnp.tile(sin, (1, NUM_HEADS)).astype(jnp.float32)

    # KV caches: FREE reshape [B,T,NKV,D] -> [B,T,NKV*D] (no transposes).
    kc = k_cache.reshape(B, T, KV_SIZE)
    vc = v_cache.reshape(B, T, KV_SIZE)
    mask3 = mask.reshape(B, S, T)
    idx = kv_write_indices.astype(jnp.int32)

    # Weights: one-time row permutation (rotary halves grouped), pre-transpose
    # to [K,N], cast to bf16 for the MXU (f32 accumulation inside the kernel).
    # TODO(synk): at real Gemma sizes do this once at weight-load time, not per call.
    perm = _qkv_row_permutation()
    w_qkv_t = params["w_qkv"][perm, :].T.astype(jnp.bfloat16)    # (H, 128)
    w_o_t = params["w_o"].T.astype(jnp.bfloat16)                 # (64, H)
    w_gate_t = params["w_gate"].T.astype(jnp.bfloat16)           # (H, I)
    w_up_t = params["w_up"].T.astype(jnp.bfloat16)
    w_down_t = params["w_down"].T.astype(jnp.bfloat16)           # (I, H)
    ln1 = params["input_ln"].reshape(1, H).astype(jnp.float32)
    ln2 = params["post_ln"].reshape(1, H).astype(jnp.float32)

    def full_spec(a):
        zeros = (0,) * a.ndim
        return pl.BlockSpec(tuple(a.shape), lambda b, _z=zeros: _z)

    def batch_spec(a):
        tail = (0,) * (a.ndim - 1)
        return pl.BlockSpec((1,) + tuple(a.shape[1:]), lambda b, _t=tail: (b,) + _t)

    out, kc_new, vc_new = pl.pallas_call(
        functools.partial(_decoder_layer_kernel, scaling=scaling, eps=RMS_EPS),
        grid=(B,),
        in_specs=[
            batch_spec(hidden_states),                              # 0
            full_spec(cos_q), full_spec(sin_q),                     # 1, 2
            pl.BlockSpec(memory_space=pltpu.MemorySpace.SMEM),      # 3: kv indices
            batch_spec(mask3),                                      # 4
            batch_spec(kc), batch_spec(vc),                         # 5, 6 (aliased)
            full_spec(w_qkv_t), full_spec(w_o_t),                   # 7, 8
            full_spec(w_gate_t), full_spec(w_up_t), full_spec(w_down_t),  # 9..11
            full_spec(ln1), full_spec(ln2),                         # 12, 13
        ],
        out_specs=(batch_spec(hidden_states), batch_spec(kc), batch_spec(vc)),
        out_shape=(
            jax.ShapeDtypeStruct(hidden_states.shape, hidden_states.dtype),
            jax.ShapeDtypeStruct(kc.shape, kc.dtype),
            jax.ShapeDtypeStruct(vc.shape, vc.dtype),
        ),
        # In-place KV cache writeback (kc is input #5, vc is input #6).
        input_output_aliases={5: 1, 6: 2},
        compiler_params=pltpu.CompilerParams(
            dimension_semantics=("parallel",)),    # batch axis -> megacore on v7x
    )(hidden_states, cos_q, sin_q, idx, mask3, kc, vc,
      w_qkv_t, w_o_t, w_gate_t, w_up_t, w_down_t, ln1, ln2)

    # FREE reshape back to the module's cache layout [B, T, NKV, D].
    k_new = kc_new.reshape(B, T, NUM_KV_HEADS, HEAD_DIM)
    v_new = vc_new.reshape(B, T, NUM_KV_HEADS, HEAD_DIM)
    return out, k_new, v_new


# ------------------------- pure-JAX reference --------------------------------
def apply_rotary_emb(x, cos, sin):
    # x: [B, S, n, D]; cos/sin: [S, D//2]  (equivalent to the torch complex form)
    half = x.shape[-1] // 2
    x1, x2 = x[..., :half], x[..., half:]
    c = cos[None, :, None, :]
    s = sin[None, :, None, :]
    return jnp.concatenate([x1 * c - x2 * s, x1 * s + x2 * c], axis=-1).astype(x.dtype)


def gemma_decoder_layer_ref(hidden_states, cos, sin, kv_write_indices,
                            k_cache, v_cache, mask, params):
    B, S, H = hidden_states.shape
    q_size = NUM_HEADS * HEAD_DIM
    kv_size = NUM_KV_HEADS * HEAD_DIM
    scaling = HEAD_DIM ** (-0.5)

    def rms(x, w):
        xf = x.astype(jnp.float32)
        xn = xf * lax.rsqrt(jnp.mean(xf * xf, -1, keepdims=True) + RMS_EPS)
        return (xn * (1.0 + w)).astype(x.dtype)

    def lin(x, w):
        return x @ w.T

    residual = hidden_states
    x = rms(hidden_states, params["input_ln"])
    qkv = lin(x, params["w_qkv"])
    xq = qkv[..., :q_size].reshape(B, S, NUM_HEADS, HEAD_DIM)
    xk = qkv[..., q_size:q_size + kv_size].reshape(B, S, NUM_KV_HEADS, HEAD_DIM)
    xv = qkv[..., q_size + kv_size:].reshape(B, S, NUM_KV_HEADS, HEAD_DIM)
    xq = apply_rotary_emb(xq, cos, sin)
    xk = apply_rotary_emb(xk, cos, sin)
    k_cache = k_cache.at[:, kv_write_indices].set(xk)
    v_cache = v_cache.at[:, kv_write_indices].set(xv)
    key = jnp.repeat(k_cache, NUM_HEADS // NUM_KV_HEADS, axis=2)
    val = jnp.repeat(v_cache, NUM_HEADS // NUM_KV_HEADS, axis=2)
    q = jnp.transpose(xq, (0, 2, 1, 3))
    k = jnp.transpose(key, (0, 2, 1, 3))
    v = jnp.transpose(val, (0, 2, 1, 3))
    scores = jnp.einsum("bhsd,bhtd->bhst", q, k) * scaling + mask
    probs = jax.nn.softmax(scores.astype(jnp.float32), axis=-1)
    out = jnp.einsum("bhst,bhtd->bhsd", probs, v)
    out = jnp.transpose(out, (0, 2, 1, 3)).reshape(B, S, q_size)
    out = lin(out, params["w_o"])
    hidden = residual + out

    residual = hidden
    x = rms(hidden, params["post_ln"])
    gate = jax.nn.gelu(lin(x, params["w_gate"]), approximate=False)
    up = lin(x, params["w_up"])
    return residual + lin(gate * up, params["w_down"]), k_cache, v_cache


# ------------------------------- main ----------------------------------------
def init_params(key):
    ks = jax.random.split(key, 5)
    scale = 0.02
    return {
        "w_qkv": scale * jax.random.normal(
            ks[0], ((NUM_HEADS + 2 * NUM_KV_HEADS) * HEAD_DIM, HIDDEN), jnp.float32),
        "w_o": scale * jax.random.normal(ks[1], (HIDDEN, NUM_HEADS * HEAD_DIM), jnp.float32),
        "w_gate": scale * jax.random.normal(ks[2], (INTERMEDIATE, HIDDEN), jnp.float32),
        "w_up": scale * jax.random.normal(ks[3], (INTERMEDIATE, HIDDEN), jnp.float32),
        "w_down": scale * jax.random.normal(ks[4], (HIDDEN, INTERMEDIATE), jnp.float32),
        # torch RMSNorm initializes weight to zeros
        "input_ln": jnp.zeros((HIDDEN,), jnp.float32),
        "post_ln": jnp.zeros((HIDDEN,), jnp.float32),
    }


if __name__ == "__main__":
    root = jax.random.PRNGKey(0)
    k_p, k_x = jax.random.split(root)
    params = init_params(k_p)

    hidden_states = jax.random.normal(k_x, (BATCH, SEQ, HIDDEN), jnp.float32)

    # rotary freqs (theta = 10000), positions 0..SEQ-1
    inv_freq = 1.0 / (10000.0 ** (jnp.arange(0, HEAD_DIM, 2, dtype=jnp.float32) / HEAD_DIM))
    angles = jnp.arange(SEQ, dtype=jnp.float32)[:, None] * inv_freq[None, :]
    cos, sin = jnp.cos(angles), jnp.sin(angles)       # each [SEQ, HEAD_DIM//2]

    kv_write_indices = jnp.arange(SEQ, dtype=jnp.int32)
    k_cache = jnp.zeros((BATCH, CACHE_LEN, NUM_KV_HEADS, HEAD_DIM), jnp.float32)
    v_cache = jnp.zeros((BATCH, CACHE_LEN, NUM_KV_HEADS, HEAD_DIM), jnp.float32)

    causal = (jnp.arange(CACHE_LEN)[None, :] <= jnp.arange(SEQ)[:, None])
    mask = jnp.where(causal, 0.0, NEG_INF).astype(jnp.float32)
    mask = jnp.broadcast_to(mask[None, None], (BATCH, 1, SEQ, CACHE_LEN))

    fwd = jax.jit(gemma_decoder_layer)
    out, k_new, v_new = fwd(hidden_states, cos, sin, kv_write_indices,
                            k_cache, v_cache, mask, params)
    jax.block_until_ready(out)

    ref_out, ref_k, ref_v = gemma_decoder_layer_ref(
        hidden_states, cos, sin, kv_write_indices, k_cache, v_cache, mask, params)
    # Tolerance 2e-2: kernel feeds the MXU with bf16 weights/activations
    # (f32 accumulation); the reference runs fully in f32.
    np.testing.assert_allclose(np.asarray(out), np.asarray(ref_out), rtol=2e-2, atol=2e-2)
    np.testing.assert_allclose(np.asarray(k_new), np.asarray(ref_k), rtol=2e-2, atol=2e-2)
    np.testing.assert_allclose(np.asarray(v_new), np.asarray(ref_v), rtol=2e-2, atol=2e-2)

    print("KERNEL_OK")
</pallas_src>

<mosaic_0001>
module attributes {stable_mosaic.version = 11 : i64} {
  func.func @_decoder_layer_kernel(%arg0: i32, %arg1: memref<1x8x32xf32, #tpu.memory_space<vmem>>, %arg2: memref<8x32xf32, #tpu.memory_space<vmem>>, %arg3: memref<8x32xf32, #tpu.memory_space<vmem>>, %arg4: memref<8xi32, #tpu.memory_space<smem>>, %arg5: memref<1x8x8xf32, #tpu.memory_space<vmem>>, %arg6: memref<1x8x32xf32, #tpu.memory_space<vmem>>, %arg7: memref<1x8x32xf32, #tpu.memory_space<vmem>>, %arg8: memref<32x128xbf16, #tpu.memory_space<vmem>>, %arg9: memref<64x32xbf16, #tpu.memory_space<vmem>>, %arg10: memref<32x64xbf16, #tpu.memory_space<vmem>>, %arg11: memref<32x64xbf16, #tpu.memory_space<vmem>>, %arg12: memref<64x32xbf16, #tpu.memory_space<vmem>>, %arg13: memref<1x32xf32, #tpu.memory_space<vmem>>, %arg14: memref<1x32xf32, #tpu.memory_space<vmem>>, %arg15: memref<1x8x32xf32, #tpu.memory_space<vmem>>, %arg16: memref<1x8x32xf32, #tpu.memory_space<vmem>>, %arg17: memref<1x8x32xf32, #tpu.memory_space<vmem>>) attributes {dimension_semantics = [#tpu.dimension_semantics<parallel>], iteration_bounds = array<i64: 2>, scalar_prefetch = 0 : i64, scratch_operands = 0 : i64, tpu.core_type = #tpu.core_type<tc>, window_params = [{transform_indices = @transform_0, window_bounds = array<i64: 1, 8, 32>}, {pipeline_mode = #tpu.pipeline_mode<synchronous>, transform_indices = @transform_1, window_bounds = array<i64: 8, 32>}, {pipeline_mode = #tpu.pipeline_mode<synchronous>, transform_indices = @transform_2, window_bounds = array<i64: 8, 32>}, {transform_indices = @transform_3, window_bounds = array<i64: 8>}, {transform_indices = @transform_4, window_bounds = array<i64: 1, 8, 8>}, {transform_indices = @transform_5, window_bounds = array<i64: 1, 8, 32>}, {transform_indices = @transform_6, window_bounds = array<i64: 1, 8, 32>}, {pipeline_mode = #tpu.pipeline_mode<synchronous>, transform_indices = @transform_7, window_bounds = array<i64: 32, 128>}, {pipeline_mode = #tpu.pipeline_mode<synchronous>, transform_indices = @transform_8, window_bounds = array<i64: 64, 32>}, {pipeline_mode = #tpu.pipeline_mode<synchronous>, transform_indices = @transform_9, window_bounds = array<i64: 32, 64>}, {pipeline_mode = #tpu.pipeline_mode<synchronous>, transform_indices = @transform_10, window_bounds = array<i64: 32, 64>}, {pipeline_mode = #tpu.pipeline_mode<synchronous>, transform_indices = @transform_11, window_bounds = array<i64: 64, 32>}, {pipeline_mode = #tpu.pipeline_mode<synchronous>, transform_indices = @transform_12, window_bounds = array<i64: 1, 32>}, {pipeline_mode = #tpu.pipeline_mode<synchronous>, transform_indices = @transform_13, window_bounds = array<i64: 1, 32>}, {transform_indices = @transform_14, window_bounds = array<i64: 1, 8, 32>}, {transform_indices = @transform_15, window_bounds = array<i64: 1, 8, 32>}, {transform_indices = @transform_16, window_bounds = array<i64: 1, 8, 32>}]} {
    %c0 = arith.constant 0 : index
    %c0_0 = arith.constant 0 : index
    %c0_1 = arith.constant 0 : index
    %0 = vector.load %arg1[%c0, %c0_0, %c0_1] : memref<1x8x32xf32, #tpu.memory_space<vmem>>, vector<1x8x32xf32>
    %1 = vector.shape_cast %0 : vector<1x8x32xf32> to vector<8x32xf32>
    %2 = arith.mulf %1, %1 : vector<8x32xf32>
    %cst = arith.constant dense<0.000000e+00> : vector<8xf32>
    %3 = vector.multi_reduction <add>, %2, %cst [1] : vector<8x32xf32> to vector<8xf32>
    %4 = vector.shape_cast %3 : vector<8xf32> to vector<8x1xf32>
    %cst_2 = arith.constant 3.200000e+01 : f32
    %5 = vector.broadcast %cst_2 : f32 to vector<8x1xf32>
    %6 = arith.divf %4, %5 : vector<8x1xf32>
    %cst_3 = arith.constant 9.99999997E-7 : f32
    %7 = vector.broadcast %cst_3 : f32 to vector<8x1xf32>
    %8 = arith.addf %6, %7 : vector<8x1xf32>
    %9 = math.rsqrt %8 : vector<8x1xf32>
    %10 = vector.broadcast %9 : vector<8x1xf32> to vector<8x32xf32>
    %11 = arith.mulf %1, %10 : vector<8x32xf32>
    %c0_4 = arith.constant 0 : index
    %c0_5 = arith.constant 0 : index
    %12 = vector.load %arg13[%c0_4, %c0_5] : memref<1x32xf32, #tpu.memory_space<vmem>>, vector<1x32xf32>
    %cst_6 = arith.constant 1.000000e+00 : f32
    %13 = vector.broadcast %cst_6 : f32 to vector<1x32xf32>
    %14 = arith.addf %13, %12 : vector<1x32xf32>
    %15 = vector.broadcast %14 : vector<1x32xf32> to vector<8x32xf32>
    %16 = arith.mulf %11, %15 : vector<8x32xf32>
    %17 = arith.truncf %16 : vector<8x32xf32> to vector<8x32xbf16>
    %c0_7 = arith.constant 0 : index
    %c0_8 = arith.constant 0 : index
    %18 = vector.load %arg8[%c0_7, %c0_8] : memref<32x128xbf16, #tpu.memory_space<vmem>>, vector<32x128xbf16>
    %cst_9 = arith.constant dense<0.000000e+00> : vector<8x128xf32>
    %19 = tpu.matmul %17, %18, %cst_9 {dimension_numbers = #tpu.dot_dimension_numbers<[1], [0], [0], [1], [0, 0, 1, 1], [], []>} : vector<8x32xbf16>, vector<32x128xbf16>, vector<8x128xf32> -> vector<8x128xf32>
    %c0_10 = arith.constant 0 : index
    %c0_11 = arith.constant 0 : index
    %20 = vector.load %arg2[%c0_10, %c0_11] : memref<8x32xf32, #tpu.memory_space<vmem>>, vector<8x32xf32>
    %c0_12 = arith.constant 0 : index
    %c0_13 = arith.constant 0 : index
    %21 = vector.load %arg3[%c0_12, %c0_13] : memref<8x32xf32, #tpu.memory_space<vmem>>, vector<8x32xf32>
    %22 = vector.extract_strided_slice %20 {offsets = [0, 0], sizes = [8, 16], strides = [1, 1]} : vector<8x32xf32> to vector<8x16xf32>
    %23 = vector.extract_strided_slice %21 {offsets = [0, 0], sizes = [8, 16], strides = [1, 1]} : vector<8x32xf32> to vector<8x16xf32>
    %24 = vector.extract_strided_slice %19 {offsets = [0, 0], sizes = [8, 32], strides = [1, 1]} : vector<8x128xf32> to vector<8x32xf32>
    %25 = vector.extract_strided_slice %19 {offsets = [0, 32], sizes = [8, 32], strides = [1, 1]} : vector<8x128xf32> to vector<8x32xf32>
    %26 = vector.extract_strided_slice %19 {offsets = [0, 64], sizes = [8, 16], strides = [1, 1]} : vector<8x128xf32> to vector<8x16xf32>
    %27 = vector.extract_strided_slice %19 {offsets = [0, 80], sizes = [8, 16], strides = [1, 1]} : vector<8x128xf32> to vector<8x16xf32>
    %28 = vector.extract_strided_slice %19 {offsets = [0, 96], sizes = [8, 32], strides = [1, 1]} : vector<8x128xf32> to vector<8x32xf32>
    %29 = arith.mulf %24, %20 : vector<8x32xf32>
    %30 = arith.mulf %25, %21 : vector<8x32xf32>
    %31 = arith.subf %29, %30 : vector<8x32xf32>
    %32 = arith.mulf %24, %21 : vector<8x32xf32>
    %33 = arith.mulf %25, %20 : vector<8x32xf32>
    %34 = arith.addf %32, %33 : vector<8x32xf32>
    %35 = arith.mulf %26, %22 : vector<8x16xf32>
    %36 = arith.mulf %27, %23 : vector<8x16xf32>
    %37 = arith.subf %35, %36 : vector<8x16xf32>
    %38 = arith.mulf %26, %23 : vector<8x16xf32>
    %39 = arith.mulf %27, %22 : vector<8x16xf32>
    %40 = arith.addf %38, %39 : vector<8x16xf32>
    %41 = vector.extract_strided_slice %31 {offsets = [0, 0], sizes = [8, 8], strides = [1, 1]} : vector<8x32xf32> to vector<8x8xf32>
    %42 = vector.extract_strided_slice %34 {offsets = [0, 0], sizes = [8, 8], strides = [1, 1]} : vector<8x32xf32> to vector<8x8xf32>
    %43 = vector.extract_strided_slice %31 {offsets = [0, 8], sizes = [8, 8], strides = [1, 1]} : vector<8x32xf32> to vector<8x8xf32>
    %44 = vector.extract_strided_slice %34 {offsets = [0, 8], sizes = [8, 8], strides = [1, 1]} : vector<8x32xf32> to vector<8x8xf32>
    %45 = vector.extract_strided_slice %31 {offsets = [0, 16], sizes = [8, 8], strides = [1, 1]} : vector<8x32xf32> to vector<8x8xf32>
    %46 = vector.extract_strided_slice %34 {offsets = [0, 16], sizes = [8, 8], strides = [1, 1]} : vector<8x32xf32> to vector<8x8xf32>
    %47 = vector.extract_strided_slice %31 {offsets = [0, 24], sizes = [8, 8], strides = [1, 1]} : vector<8x32xf32> to vector<8x8xf32>
    %48 = vector.extract_strided_slice %34 {offsets = [0, 24], sizes = [8, 8], strides = [1, 1]} : vector<8x32xf32> to vector<8x8xf32>
    %49 = tpu.concatenate %41, %42, %43, %44, %45, %46, %47, %48 in 1 : vector<8x8xf32>, vector<8x8xf32>, vector<8x8xf32>, vector<8x8xf32>, vector<8x8xf32>, vector<8x8xf32>, vector<8x8xf32>, vector<8x8xf32> -> vector<8x64xf32>
    %cst_14 = arith.constant 2.500000e-01 : f32
    %50 = vector.broadcast %cst_14 : f32 to vector<8x64xf32>
    %51 = arith.mulf %49, %50 : vector<8x64xf32>
    %52 = vector.extract_strided_slice %37 {offsets = [0, 0], sizes = [8, 8], strides = [1, 1]} : vector<8x16xf32> to vector<8x8xf32>
    %53 = vector.extract_strided_slice %40 {offsets = [0, 0], sizes = [8, 8], strides = [1, 1]} : vector<8x16xf32> to vector<8x8xf32>
    %54 = vector.extract_strided_slice %37 {offsets = [0, 8], sizes = [8, 8], strides = [1, 1]} : vector<8x16xf32> to vector<8x8xf32>
    %55 = vector.extract_strided_slice %40 {offsets = [0, 8], sizes = [8, 8], strides = [1, 1]} : vector<8x16xf32> to vector<8x8xf32>
    %56 = tpu.concatenate %52, %53, %54, %55 in 1 : vector<8x8xf32>, vector<8x8xf32>, vector<8x8xf32>, vector<8x8xf32> -> vector<8x32xf32>
    %57 = tpu.concatenate %56, %28 in 1 : vector<8x32xf32>, vector<8x32xf32> -> vector<8x64xf32>
    %c0_15 = arith.constant 0 : index
    %c0_16 = arith.constant 0 : index
    %c0_17 = arith.constant 0 : index
    %58 = vector.load %arg6[%c0_15, %c0_16, %c0_17] : memref<1x8x32xf32, #tpu.memory_space<vmem>>, vector<1x8x32xf32>
    %59 = vector.shape_cast %58 : vector<1x8x32xf32> to vector<8x32xf32>
    %c0_18 = arith.constant 0 : index
    %c0_19 = arith.constant 0 : index
    %c0_20 = arith.constant 0 : index
    %60 = vector.load %arg7[%c0_18, %c0_19, %c0_20] : memref<1x8x32xf32, #tpu.memory_space<vmem>>, vector<1x8x32xf32>
    %61 = vector.shape_cast %60 : vector<1x8x32xf32> to vector<8x32xf32>
    %62 = tpu.concatenate %59, %61 in 1 : vector<8x32xf32>, vector<8x32xf32> -> vector<8x64xf32>
    %63 = tpu.iota {dimensions = array<i32: 0>} : vector<8x1xi32>
    %c0_21 = arith.constant 0 : index
    %64 = memref.load %arg4[%c0_21] : memref<8xi32, #tpu.memory_space<smem>>
    %65 = vector.broadcast %64 : i32 to vector<8x1xi32>
    %66 = arith.cmpi eq, %63, %65 : vector<8x1xi32>
    %67 = vector.extract_strided_slice %57 {offsets = [0, 0], sizes = [1, 64], strides = [1, 1]} : vector<8x64xf32> to vector<1x64xf32>
    %68 = vector.shape_cast %66 : vector<8x1xi1> to vector<8x1xi1>
    %69 = vector.broadcast %68 : vector<8x1xi1> to vector<8x64xi1>
    %70 = vector.shape_cast %67 : vector<1x64xf32> to vector<1x64xf32>
    %71 = vector.broadcast %70 : vector<1x64xf32> to vector<8x64xf32>
    %72 = arith.select %69, %71, %62 : vector<8x64xi1>, vector<8x64xf32>
    %c1 = arith.constant 1 : index
    %73 = memref.load %arg4[%c1] : memref<8xi32, #tpu.memory_space<smem>>
    %74 = vector.broadcast %73 : i32 to vector<8x1xi32>
    %75 = arith.cmpi eq, %63, %74 : vector<8x1xi32>
    %76 = vector.extract_strided_slice %57 {offsets = [1, 0], sizes = [1, 64], strides = [1, 1]} : vector<8x64xf32> to vector<1x64xf32>
    %77 = vector.shape_cast %75 : vector<8x1xi1> to vector<8x1xi1>
    %78 = vector.broadcast %77 : vector<8x1xi1> to vector<8x64xi1>
    %79 = vector.shape_cast %76 : vector<1x64xf32> to vector<1x64xf32>
    %80 = vector.broadcast %79 : vector<1x64xf32> to vector<8x64xf32>
    %81 = arith.select %78, %80, %72 : vector<8x64xi1>, vector<8x64xf32>
    %c2 = arith.constant 2 : index
    %82 = memref.load %arg4[%c2] : memref<8xi32, #tpu.memory_space<smem>>
    %83 = vector.broadcast %82 : i32 to vector<8x1xi32>
    %84 = arith.cmpi eq, %63, %83 : vector<8x1xi32>
    %85 = vector.extract_strided_slice %57 {offsets = [2, 0], sizes = [1, 64], strides = [1, 1]} : vector<8x64xf32> to vector<1x64xf32>
    %86 = vector.shape_cast %84 : vector<8x1xi1> to vector<8x1xi1>
    %87 = vector.broadcast %86 : vector<8x1xi1> to vector<8x64xi1>
    %88 = vector.shape_cast %85 : vector<1x64xf32> to vector<1x64xf32>
    %89 = vector.broadcast %88 : vector<1x64xf32> to vector<8x64xf32>
    %90 = arith.select %87, %89, %81 : vector<8x64xi1>, vector<8x64xf32>
    %c3 = arith.constant 3 : index
    %91 = memref.load %arg4[%c3] : memref<8xi32, #tpu.memory_space<smem>>
    %92 = vector.broadcast %91 : i32 to vector<8x1xi32>
    %93 = arith.cmpi eq, %63, %92 : vector<8x1xi32>
    %94 = vector.extract_strided_slice %57 {offsets = [3, 0], sizes = [1, 64], strides = [1, 1]} : vector<8x64xf32> to vector<1x64xf32>
    %95 = vector.shape_cast %93 : vector<8x1xi1> to vector<8x1xi1>
    %96 = vector.broadcast %95 : vector<8x1xi1> to vector<8x64xi1>
    %97 = vector.shape_cast %94 : vector<1x64xf32> to vector<1x64xf32>
    %98 = vector.broadcast %97 : vector<1x64xf32> to vector<8x64xf32>
    %99 = arith.select %96, %98, %90 : vector<8x64xi1>, vector<8x64xf32>
    %c4 = arith.constant 4 : index
    %100 = memref.load %arg4[%c4] : memref<8xi32, #tpu.memory_space<smem>>
    %101 = vector.broadcast %100 : i32 to vector<8x1xi32>
    %102 = arith.cmpi eq, %63, %101 : vector<8x1xi32>
    %103 = vector.extract_strided_slice %57 {offsets = [4, 0], sizes = [1, 64], strides = [1, 1]} : vector<8x64xf32> to vector<1x64xf32>
    %104 = vector.shape_cast %102 : vector<8x1xi1> to vector<8x1xi1>
    %105 = vector.broadcast %104 : vector<8x1xi1> to vector<8x64xi1>
    %106 = vector.shape_cast %103 : vector<1x64xf32> to vector<1x64xf32>
    %107 = vector.broadcast %106 : vector<1x64xf32> to vector<8x64xf32>
    %108 = arith.select %105, %107, %99 : vector<8x64xi1>, vector<8x64xf32>
    %c5 = arith.constant 5 : index
    %109 = memref.load %arg4[%c5] : memref<8xi32, #tpu.memory_space<smem>>
    %110 = vector.broadcast %109 : i32 to vector<8x1xi32>
    %111 = arith.cmpi eq, %63, %110 : vector<8x1xi32>
    %112 = vector.extract_strided_slice %57 {offsets = [5, 0], sizes = [1, 64], strides = [1, 1]} : vector<8x64xf32> to vector<1x64xf32>
    %113 = vector.shape_cast %111 : vector<8x1xi1> to vector<8x1xi1>
    %114 = vector.broadcast %113 : vector<8x1xi1> to vector<8x64xi1>
    %115 = vector.shape_cast %112 : vector<1x64xf32> to vector<1x64xf32>
    %116 = vector.broadcast %115 : vector<1x64xf32> to vector<8x64xf32>
    %117 = arith.select %114, %116, %108 : vector<8x64xi1>, vector<8x64xf32>
    %c6 = arith.constant 6 : index
    %118 = memref.load %arg4[%c6] : memref<8xi32, #tpu.memory_space<smem>>
    %119 = vector.broadcast %118 : i32 to vector<8x1xi32>
    %120 = arith.cmpi eq, %63, %119 : vector<8x1xi32>
    %121 = vector.extract_strided_slice %57 {offsets = [6, 0], sizes = [1, 64], strides = [1, 1]} : vector<8x64xf32> to vector<1x64xf32>
    %122 = vector.shape_cast %120 : vector<8x1xi1> to vector<8x1xi1>
    %123 = vector.broadcast %122 : vector<8x1xi1> to vector<8x64xi1>
    %124 = vector.shape_cast %121 : vector<1x64xf32> to vector<1x64xf32>
    %125 = vector.broadcast %124 : vector<1x64xf32> to vector<8x64xf32>
    %126 = arith.select %123, %125, %117 : vector<8x64xi1>, vector<8x64xf32>
    %c7 = arith.constant 7 : index
    %127 = memref.load %arg4[%c7] : memref<8xi32, #tpu.memory_space<smem>>
    %128 = vector.broadcast %127 : i32 to vector<8x1xi32>
    %129 = arith.cmpi eq, %63, %128 : vector<8x1xi32>
    %130 = vector.extract_strided_slice %57 {offsets = [7, 0], sizes = [1, 64], strides = [1, 1]} : vector<8x64xf32> to vector<1x64xf32>
    %131 = vector.shape_cast %129 : vector<8x1xi1> to vector<8x1xi1>
    %132 = vector.broadcast %131 : vector<8x1xi1> to vector<8x64xi1>
    %133 = vector.shape_cast %130 : vector<1x64xf32> to vector<1x64xf32>
    %134 = vector.broadcast %133 : vector<1x64xf32> to vector<8x64xf32>
    %135 = arith.select %132, %134, %126 : vector<8x64xi1>, vector<8x64xf32>
    %136 = vector.extract_strided_slice %135 {offsets = [0, 0], sizes = [8, 32], strides = [1, 1]} : vector<8x64xf32> to vector<8x32xf32>
    %c0_22 = arith.constant 0 : index
    %c0_23 = arith.constant 0 : index
    %c0_24 = arith.constant 0 : index
    %137 = vector.load %arg16[%c0_22, %c0_23, %c0_24] : memref<1x8x32xf32, #tpu.memory_space<vmem>>, vector<1x8x32xf32>
    %138 = vector.shape_cast %137 : vector<1x8x32xf32> to vector<8x32xf32>
    %139 = vector.shape_cast %136 : vector<8x32xf32> to vector<1x8x32xf32>
    tpu.vector_store %arg16[%c0_22, %c0_23, %c0_24], %139 {strides = array<i32>} : memref<1x8x32xf32, #tpu.memory_space<vmem>>, vector<1x8x32xf32>,
    %140 = vector.extract_strided_slice %135 {offsets = [0, 32], sizes = [8, 32], strides = [1, 1]} : vector<8x64xf32> to vector<8x32xf32>
    %c0_25 = arith.constant 0 : index
    %c0_26 = arith.constant 0 : index
    %c0_27 = arith.constant 0 : index
    %141 = vector.load %arg17[%c0_25, %c0_26, %c0_27] : memref<1x8x32xf32, #tpu.memory_space<vmem>>, vector<1x8x32xf32>
    %142 = vector.shape_cast %141 : vector<1x8x32xf32> to vector<8x32xf32>
    %143 = vector.shape_cast %140 : vector<8x32xf32> to vector<1x8x32xf32>
    tpu.vector_store %arg17[%c0_25, %c0_26, %c0_27], %143 {strides = array<i32>} : memref<1x8x32xf32, #tpu.memory_space<vmem>>, vector<1x8x32xf32>,
    %c0_28 = arith.constant 0 : index
    %c0_29 = arith.constant 0 : index
    %c0_30 = arith.constant 0 : index
    %144 = vector.load %arg5[%c0_28, %c0_29, %c0_30] : memref<1x8x8xf32, #tpu.memory_space<vmem>>, vector<1x8x8xf32>
    %145 = vector.shape_cast %144 : vector<1x8x8xf32> to vector<8x8xf32>
    %146 = tpu.concatenate %145, %145 in 0 : vector<8x8xf32>, vector<8x8xf32> -> vector<16x8xf32>
    %147 = vector.extract_strided_slice %135 {offsets = [0, 0], sizes = [8, 16], strides = [1, 1]} : vector<8x64xf32> to vector<8x16xf32>
    %148 = arith.truncf %147 : vector<8x16xf32> to vector<8x16xbf16>
    %149 = vector.extract_strided_slice %135 {offsets = [0, 32], sizes = [8, 16], strides = [1, 1]} : vector<8x64xf32> to vector<8x16xf32>
    %150 = arith.truncf %149 : vector<8x16xf32> to vector<8x16xbf16>
    %151 = vector.extract_strided_slice %51 {offsets = [0, 0], sizes = [8, 16], strides = [1, 1]} : vector<8x64xf32> to vector<8x16xf32>
    %152 = vector.extract_strided_slice %51 {offsets = [0, 16], sizes = [8, 16], strides = [1, 1]} : vector<8x64xf32> to vector<8x16xf32>
    %153 = tpu.concatenate %151, %152 in 0 : vector<8x16xf32>, vector<8x16xf32> -> vector<16x16xf32>
    %154 = arith.truncf %153 : vector<16x16xf32> to vector<16x16xbf16>
    %cst_31 = arith.constant dense<0.000000e+00> : vector<16x8xf32>
    %155 = tpu.matmul %154, %148, %cst_31 {dimension_numbers = #tpu.dot_dimension_numbers<[1], [1], [0], [0], [0, 0, 1, 0], [], []>} : vector<16x16xbf16>, vector<8x16xbf16>, vector<16x8xf32> -> vector<16x8xf32>
    %156 = arith.addf %155, %146 : vector<16x8xf32>
    %cst_32 = arith.constant dense<0xFF800000> : vector<16xf32>
    %157 = vector.multi_reduction <maximumf>, %156, %cst_32 [1] : vector<16x8xf32> to vector<16xf32>
    %158 = vector.shape_cast %157 : vector<16xf32> to vector<16x1xf32>
    %159 = vector.broadcast %158 : vector<16x1xf32> to vector<16x8xf32>
    %160 = arith.subf %156, %159 : vector<16x8xf32>
    %161 = math.exp %160 : vector<16x8xf32>
    %cst_33 = arith.constant dense<0.000000e+00> : vector<16xf32>
    %162 = vector.multi_reduction <add>, %161, %cst_33 [1] : vector<16x8xf32> to vector<16xf32>
    %163 = vector.shape_cast %162 : vector<16xf32> to vector<16x1xf32>
    %164 = tpu.reciprocal %163 {approx = true} : vector<16x1xf32> -> vector<16x1xf32>
    %165 = vector.broadcast %164 : vector<16x1xf32> to vector<16x8xf32>
    %166 = arith.mulf %161, %165 : vector<16x8xf32>
    %167 = arith.truncf %166 : vector<16x8xf32> to vector<16x8xbf16>
    %cst_34 = arith.constant dense<0.000000e+00> : vector<16x16xf32>
    %168 = tpu.matmul %167, %150, %cst_34 {dimension_numbers = #tpu.dot_dimension_numbers<[1], [0], [0], [1], [0, 0, 1, 1], [], []>} : vector<16x8xbf16>, vector<8x16xbf16>, vector<16x16xf32> -> vector<16x16xf32>
    %169 = vector.extract_strided_slice %168 {offsets = [0, 0], sizes = [8, 16], strides = [1, 1]} : vector<16x16xf32> to vector<8x16xf32>
    %170 = vector.extract_strided_slice %168 {offsets = [8, 0], sizes = [8, 16], strides = [1, 1]} : vector<16x16xf32> to vector<8x16xf32>
    %171 = vector.extract_strided_slice %135 {offsets = [0, 16], sizes = [8, 16], strides = [1, 1]} : vector<8x64xf32> to vector<8x16xf32>
    %172 = arith.truncf %171 : vector<8x16xf32> to vector<8x16xbf16>
    %173 = vector.extract_strided_slice %135 {offsets = [0, 48], sizes = [8, 16], strides = [1, 1]} : vector<8x64xf32> to vector<8x16xf32>
    %174 = arith.truncf %173 : vector<8x16xf32> to vector<8x16xbf16>
    %175 = vector.extract_strided_slice %51 {offsets = [0, 32], sizes = [8, 16], strides = [1, 1]} : vector<8x64xf32> to vector<8x16xf32>
    %176 = vector.extract_strided_slice %51 {offsets = [0, 48], sizes = [8, 16], strides = [1, 1]} : vector<8x64xf32> to vector<8x16xf32>
    %177 = tpu.concatenate %175, %176 in 0 : vector<8x16xf32>, vector<8x16xf32> -> vector<16x16xf32>
    %178 = arith.truncf %177 : vector<16x16xf32> to vector<16x16xbf16>
    %cst_35 = arith.constant dense<0.000000e+00> : vector<16x8xf32>
    %179 = tpu.matmul %178, %172, %cst_35 {dimension_numbers = #tpu.dot_dimension_numbers<[1], [1], [0], [0], [0, 0, 1, 0], [], []>} : vector<16x16xbf16>, vector<8x16xbf16>, vector<16x8xf32> -> vector<16x8xf32>
    %180 = arith.addf %179, %146 : vector<16x8xf32>
    %cst_36 = arith.constant dense<0xFF800000> : vector<16xf32>
    %181 = vector.multi_reduction <maximumf>, %180, %cst_36 [1] : vector<16x8xf32> to vector<16xf32>
    %182 = vector.shape_cast %181 : vector<16xf32> to vector<16x1xf32>
    %183 = vector.broadcast %182 : vector<16x1xf32> to vector<16x8xf32>
    %184 = arith.subf %180, %183 : vector<16x8xf32>
    %185 = math.exp %184 : vector<16x8xf32>
    %cst_37 = arith.constant dense<0.000000e+00> : vector<16xf32>
    %186 = vector.multi_reduction <add>, %185, %cst_37 [1] : vector<16x8xf32> to vector<16xf32>
    %187 = vector.shape_cast %186 : vector<16xf32> to vector<16x1xf32>
    %188 = tpu.reciprocal %187 {approx = true} : vector<16x1xf32> -> vector<16x1xf32>
    %189 = vector.broadcast %188 : vector<16x1xf32> to vector<16x8xf32>
    %190 = arith.mulf %185, %189 : vector<16x8xf32>
    %191 = arith.truncf %190 : vector<16x8xf32> to vector<16x8xbf16>
    %cst_38 = arith.constant dense<0.000000e+00> : vector<16x16xf32>
    %192 = tpu.matmul %191, %174, %cst_38 {dimension_numbers = #tpu.dot_dimension_numbers<[1], [0], [0], [1], [0, 0, 1, 1], [], []>} : vector<16x8xbf16>, vector<8x16xbf16>, vector<16x16xf32> -> vector<16x16xf32>
    %193 = vector.extract_strided_slice %192 {offsets = [0, 0], sizes = [8, 16], strides = [1, 1]} : vector<16x16xf32> to vector<8x16xf32>
    %194 = vector.extract_strided_slice %192 {offsets = [8, 0], sizes = [8, 16], strides = [1, 1]} : vector<16x16xf32> to vector<8x16xf32>
    %195 = tpu.concatenate %169, %170, %193, %194 in 1 : vector<8x16xf32>, vector<8x16xf32>, vector<8x16xf32>, vector<8x16xf32> -> vector<8x64xf32>
    %196 = arith.truncf %195 : vector<8x64xf32> to vector<8x64xbf16>
    %c0_39 = arith.constant 0 : index
    %c0_40 = arith.constant 0 : index
    %197 = vector.load %arg9[%c0_39, %c0_40] : memref<64x32xbf16, #tpu.memory_space<vmem>>, vector<64x32xbf16>
    %cst_41 = arith.constant dense<0.000000e+00> : vector<8x32xf32>
    %198 = tpu.matmul %196, %197, %cst_41 {dimension_numbers = #tpu.dot_dimension_numbers<[1], [0], [0], [1], [0, 0, 1, 1], [], []>} : vector<8x64xbf16>, vector<64x32xbf16>, vector<8x32xf32> -> vector<8x32xf32>
    %199 = arith.addf %1, %198 : vector<8x32xf32>
    %200 = arith.mulf %199, %199 : vector<8x32xf32>
    %cst_42 = arith.constant dense<0.000000e+00> : vector<8xf32>
    %201 = vector.multi_reduction <add>, %200, %cst_42 [1] : vector<8x32xf32> to vector<8xf32>
    %202 = vector.shape_cast %201 : vector<8xf32> to vector<8x1xf32>
    %cst_43 = arith.constant 3.200000e+01 : f32
    %203 = vector.broadcast %cst_43 : f32 to vector<8x1xf32>
    %204 = arith.divf %202, %203 : vector<8x1xf32>
    %cst_44 = arith.constant 9.99999997E-7 : f32
    %205 = vector.broadcast %cst_44 : f32 to vector<8x1xf32>
    %206 = arith.addf %204, %205 : vector<8x1xf32>
    %207 = math.rsqrt %206 : vector<8x1xf32>
    %208 = vector.broadcast %207 : vector<8x1xf32> to vector<8x32xf32>
    %209 = arith.mulf %199, %208 : vector<8x32xf32>
    %c0_45 = arith.constant 0 : index
    %c0_46 = arith.constant 0 : index
    %210 = vector.load %arg14[%c0_45, %c0_46] : memref<1x32xf32, #tpu.memory_space<vmem>>, vector<1x32xf32>
    %cst_47 = arith.constant 1.000000e+00 : f32
    %211 = vector.broadcast %cst_47 : f32 to vector<1x32xf32>
    %212 = arith.addf %211, %210 : vector<1x32xf32>
    %213 = vector.broadcast %212 : vector<1x32xf32> to vector<8x32xf32>
    %214 = arith.mulf %209, %213 : vector<8x32xf32>
    %215 = arith.truncf %214 : vector<8x32xf32> to vector<8x32xbf16>
    %c0_48 = arith.constant 0 : index
    %c0_49 = arith.constant 0 : index
    %216 = vector.load %arg10[%c0_48, %c0_49] : memref<32x64xbf16, #tpu.memory_space<vmem>>, vector<32x64xbf16>
    %cst_50 = arith.constant dense<0.000000e+00> : vector<8x64xf32>
    %217 = tpu.matmul %215, %216, %cst_50 {dimension_numbers = #tpu.dot_dimension_numbers<[1], [0], [0], [1], [0, 0, 1, 1], [], []>} : vector<8x32xbf16>, vector<32x64xbf16>, vector<8x64xf32> -> vector<8x64xf32>
    %cst_51 = arith.constant 5.000000e-01 : f32
    %218 = vector.broadcast %cst_51 : f32 to vector<8x64xf32>
    %219 = arith.mulf %218, %217 : vector<8x64xf32>
    %cst_52 = arith.constant 0.707106769 : f32
    %220 = vector.broadcast %cst_52 : f32 to vector<8x64xf32>
    %221 = arith.mulf %217, %220 : vector<8x64xf32>
    %222 = math.erf %221 : vector<8x64xf32>
    %cst_53 = arith.constant 1.000000e+00 : f32
    %223 = vector.broadcast %cst_53 : f32 to vector<8x64xf32>
    %224 = arith.addf %223, %222 : vector<8x64xf32>
    %225 = arith.mulf %219, %224 : vector<8x64xf32>
    %c0_54 = arith.constant 0 : index
    %c0_55 = arith.constant 0 : index
    %226 = vector.load %arg11[%c0_54, %c0_55] : memref<32x64xbf16, #tpu.memory_space<vmem>>, vector<32x64xbf16>
    %cst_56 = arith.constant dense<0.000000e+00> : vector<8x64xf32>
    %227 = tpu.matmul %215, %226, %cst_56 {dimension_numbers = #tpu.dot_dimension_numbers<[1], [0], [0], [1], [0, 0, 1, 1], [], []>} : vector<8x32xbf16>, vector<32x64xbf16>, vector<8x64xf32> -> vector<8x64xf32>
    %228 = arith.mulf %225, %227 : vector<8x64xf32>
    %229 = arith.truncf %228 : vector<8x64xf32> to vector<8x64xbf16>
    %c0_57 = arith.constant 0 : index
    %c0_58 = arith.constant 0 : index
    %230 = vector.load %arg12[%c0_57, %c0_58] : memref<64x32xbf16, #tpu.memory_space<vmem>>, vector<64x32xbf16>
    %cst_59 = arith.constant dense<0.000000e+00> : vector<8x32xf32>
    %231 = tpu.matmul %229, %230, %cst_59 {dimension_numbers = #tpu.dot_dimension_numbers<[1], [0], [0], [1], [0, 0, 1, 1], [], []>} : vector<8x64xbf16>, vector<64x32xbf16>, vector<8x32xf32> -> vector<8x32xf32>
    %232 = arith.addf %199, %231 : vector<8x32xf32>
    %c0_60 = arith.constant 0 : index
    %c0_61 = arith.constant 0 : index
    %c0_62 = arith.constant 0 : index
    %233 = vector.load %arg15[%c0_60, %c0_61, %c0_62] : memref<1x8x32xf32, #tpu.memory_space<vmem>>, vector<1x8x32xf32>
    %234 = vector.shape_cast %233 : vector<1x8x32xf32> to vector<8x32xf32>
    %235 = vector.shape_cast %232 : vector<8x32xf32> to vector<1x8x32xf32>
    tpu.vector_store %arg15[%c0_60, %c0_61, %c0_62], %235 {strides = array<i32>} : memref<1x8x32xf32, #tpu.memory_space<vmem>>, vector<1x8x32xf32>,
    return
  }
  func.func @transform_0(%arg0: i32) -> (i32, i32, i32) {
    %c0_i32 = arith.constant 0 : i32
    %c0_i32_0 = arith.constant 0 : i32
    %c0_i32_1 = arith.constant 0 : i32
    return %arg0, %c0_i32, %c0_i32_0 : i32, i32, i32
  }
  func.func @transform_1(%arg0: i32) -> (i32, i32) {
    %c0_i32 = arith.constant 0 : i32
    %c0_i32_0 = arith.constant 0 : i32
    %c0_i32_1 = arith.constant 0 : i32
    return %c0_i32, %c0_i32_0 : i32, i32
  }
  func.func @transform_2(%arg0: i32) -> (i32, i32) {
    %c0_i32 = arith.constant 0 : i32
    %c0_i32_0 = arith.constant 0 : i32
    %c0_i32_1 = arith.constant 0 : i32
    return %c0_i32, %c0_i32_0 : i32, i32
  }
  func.func @transform_3(%arg0: i32) -> i32 {
    %c0_i32 = arith.constant 0 : i32
    %c0_i32_0 = arith.constant 0 : i32
    return %c0_i32 : i32
  }
  func.func @transform_4(%arg0: i32) -> (i32, i32, i32) {
    %c0_i32 = arith.constant 0 : i32
    %c0_i32_0 = arith.constant 0 : i32
    %c0_i32_1 = arith.constant 0 : i32
    return %arg0, %c0_i32, %c0_i32_0 : i32, i32, i32
  }
  func.func @transform_5(%arg0: i32) -> (i32, i32, i32) {
    %c0_i32 = arith.constant 0 : i32
    %c0_i32_0 = arith.constant 0 : i32
    %c0_i32_1 = arith.constant 0 : i32
    return %arg0, %c0_i32, %c0_i32_0 : i32, i32, i32
  }
  func.func @transform_6(%arg0: i32) -> (i32, i32, i32) {
    %c0_i32 = arith.constant 0 : i32
    %c0_i32_0 = arith.constant 0 : i32
    %c0_i32_1 = arith.constant 0 : i32
    return %arg0, %c0_i32, %c0_i32_0 : i32, i32, i32
  }
  func.func @transform_7(%arg0: i32) -> (i32, i32) {
    %c0_i32 = arith.constant 0 : i32
    %c0_i32_0 = arith.constant 0 : i32
    %c0_i32_1 = arith.constant 0 : i32
    return %c0_i32, %c0_i32_0 : i32, i32
  }
  func.func @transform_8(%arg0: i32) -> (i32, i32) {
    %c0_i32 = arith.constant 0 : i32
    %c0_i32_0 = arith.constant 0 : i32
    %c0_i32_1 = arith.constant 0 : i32
    return %c0_i32, %c0_i32_0 : i32, i32
  }
  func.func @transform_9(%arg0: i32) -> (i32, i32) {
    %c0_i32 = arith.constant 0 : i32
    %c0_i32_0 = arith.constant 0 : i32
    %c0_i32_1 = arith.constant 0 : i32
    return %c0_i32, %c0_i32_0 : i32, i32
  }
  func.func @transform_10(%arg0: i32) -> (i32, i32) {
    %c0_i32 = arith.constant 0 : i32
    %c0_i32_0 = arith.constant 0 : i32
    %c0_i32_1 = arith.constant 0 : i32
    return %c0_i32, %c0_i32_0 : i32, i32
  }
  func.func @transform_11(%arg0: i32) -> (i32, i32) {
    %c0_i32 = arith.constant 0 : i32
    %c0_i32_0 = arith.constant 0 : i32
    %c0_i32_1 = arith.constant 0 : i32
    return %c0_i32, %c0_i32_0 : i32, i32
  }
  func.func @transform_12(%arg0: i32) -> (i32, i32) {
    %c0_i32 = arith.constant 0 : i32
    %c0_i32_0 = arith.constant 0 : i32
    %c0_i32_1 = arith.constant 0 : i32
    return %c0_i32, %c0_i32_0 : i32, i32
  }
  func.func @transform_13(%arg0: i32) -> (i32, i32) {
    %c0_i32 = arith.constant 0 : i32
    %c0_i32_0 = arith.constant 0 : i32
    %c0_i32_1 = arith.constant 0 : i32
    return %c0_i32, %c0_i32_0 : i32, i32
  }
  func.func @transform_14(%arg0: i32) -> (i32, i32, i32) {
    %c0_i32 = arith.constant 0 : i32
    %c0_i32_0 = arith.constant 0 : i32
    %c0_i32_1 = arith.constant 0 : i32
    return %arg0, %c0_i32, %c0_i32_0 : i32, i32, i32
  }
  func.func @transform_15(%arg0: i32) -> (i32, i32, i32) {
    %c0_i32 = arith.constant 0 : i32
    %c0_i32_0 = arith.constant 0 : i32
    %c0_i32_1 = arith.constant 0 : i32
    return %arg0, %c0_i32, %c0_i32_0 : i32, i32, i32
  }
  func.func @transform_16(%arg0: i32) -> (i32, i32, i32) {
    %c0_i32 = arith.constant 0 : i32
    %c0_i32_0 = arith.constant 0 : i32
    %c0_i32_1 = arith.constant 0 : i32
    return %arg0, %c0_i32, %c0_i32_0 : i32, i32, i32
  }
}

</mosaic_0001>

<bundles_post_ra>
// kernel: tile.14
= control target key start
LH: loop header
LB: loop body
LE: loop exit
PB: predicated region body
PF: predicated region fallthrough
CT: control target
= control target key end

     0   :  { %vm42_vm0 = vcmask 1047556   ;;  %vm44_vm1 = vcmask 64512   ;;  %s93_s22 = smov 8   ;;  %s94_s25 = smov 16   ;;  %vm54_vm2 = vcmask 261312   ;;  %vm64_vm3 = vcmask 195712   ;;  %s146_s0 = inlined_call_operand.vmem [shape: f32[8,4,8], index: 0, kind: input, shape index: {}]   ;;  %s147_s1 = inlined_call_operand.vmem [shape: f32[8,32], index: 1, kind: output, shape index: {}]  }
   0x1   :  { %v82_v0 = vld [vmem:[%s146_s0 + $0x1c] sm:$0xf]  ;;  %v83_v1 = vld [vmem:[%s146_s0 + $0x18] sm:$0xf]  ;;  %v84_v2 = vld [vmem:[%s146_s0 + $0x14] sm:$0xf] }
   0x2   :  { %8 = vst [vmem:[#allocation0 + $0x38] sm:$0xf] %v82_v0  ;;  %13 = vst [vmem:[#allocation0 + $0x30] sm:$0xf] %v83_v1  ;;  %v85_v3 = vld [vmem:[%s146_s0 + $0x10] sm:$0xf] }
   0x3   :  { %18 = vst [vmem:[#allocation0 + $0x28] sm:$0xf] %v84_v2  ;;  %v86_v4 = vld [vmem:[%s146_s0 + $0xc] sm:$0xf]  ;;  %v87_v5 = vld [vmem:[%s146_s0 + $0x8] sm:$0xf] }
   0x4   :  { %23 = vst [vmem:[#allocation0 + $0x20] sm:$0xf] %v85_v3  ;;  %28 = vst [vmem:[#allocation0 + $0x18] sm:$0xf] %v86_v4  ;;  %v88_v6 = vld [vmem:[%s146_s0 + $0x4] sm:$0xf] }
   0x5   :  { %33 = vst [vmem:[#allocation0 + $0x10] sm:$0xf] %v87_v5  ;;  %v38_v7 = vld [vmem:[%s146_s0] sm:$0xf]  ;;  %37 = vst [vmem:[#allocation0 + $0x8] sm:$0xf] %v88_v6 }
   0x6   :  { %39 = vst [vmem:[#allocation0] sm:$0xf] %v38_v7  ;;  %s92_s0 = smov 24   ;;  %vm74_vm4 = vcmask 130112  }
   0xb   :  { %v49_v8 = vld [vmem:[#allocation0 + $0x3] ss:$8 sm:$0xf0]   ;;  %v59_v9 = vld [vmem:[#allocation0 + $0x2] ss:$8 sm:$0xf0]  }
   0xc   :  { %v69_v14 = vld [vmem:[#allocation0 + $0x1] ss:$8 sm:$0xf0]   ;;  %v41_v17 = vld [vmem:[#allocation0] ss:$8 sm:$0xf0]  }
   0xd   :  { %v47_v10 = vld [vmem:[#allocation0 + $0x3] ss:$8 sm:$0xf]   ;;  %v57_v11 = vld [vmem:[#allocation0 + $0x2] ss:$8 sm:$0xf]  }
   0xe   :  { %v51_v12 = vsel %vm42_vm0, %v49_v8, %v47_v10  ;;  %v67_v13 = vld [vmem:[#allocation0 + $0x1] ss:$8 sm:$0xf]   ;;  %v40_v16 = vld [vmem:[#allocation0] ss:$8 sm:$0xf]   ;;  %v61_v18 = vsel %vm42_vm0, %v59_v9, %v57_v11 }
   0xf   :  { %52 = vrot.lane.b32.xlu0 %v51_v12, %s92_s0  ;;  %v71_v15 = vsel %vm42_vm0, %v69_v14, %v67_v13  ;;  %v43_v19 = vsel %vm42_vm0, %v41_v17, %v40_v16 }
  0x10   :  { %72 = vrot.lane.b32.xlu1 %v71_v15, %s93_s22  ;;  %45 = vst.msk [vmem:[%s147_s1] sm:$0xff] %vm44_vm1, %v43_v19  }
  0x13   :  { %62 = vrot.lane.b32.xlu0 %v61_v18, %s94_s25 }
  0x81   :  { %v53_v20 = vpop.permute.xlu0 %52  }
  0x82   :  { %55 = vst.msk [vmem:[%s147_s1] sm:$0xff] %vm54_vm2, %v53_v20   ;;  %v73_v21 = vpop.permute.xlu1 %72  }
  0x85   :  { %v63_v22 = vpop.permute.xlu0 %62  }
  0x86   :  { %65 = vst.msk [vmem:[%s147_s1] sm:$0xff] %vm64_vm3, %v63_v22  }
  0x87   :  { %75 = vst.msk [vmem:[%s147_s1] sm:$0xff] %vm74_vm4, %v73_v21  }

// kernel: gemma_decoder_layer.1
= control target key start
LH: loop header
LB: loop body
LE: loop exit
PB: predicated region body
PF: predicated region fallthrough
CT: control target
= control target key end

     0   :  { %s2436_s0 = inlined_call_operand.vmem [shape: f32[2,8,32], index: 0, kind: input, shape index: {}]   ;;  %s2437_s1 = inlined_call_operand.vmem [shape: f32[8,32], index: 1, kind: input, shape index: {}]   ;;  %s2438_s2 = inlined_call_operand.vmem [shape: f32[8,32], index: 2, kind: input, shape index: {}]   ;;  %s2439_s3 = inlined_call_operand.vmem [shape: s32[8], index: 3, kind: input, shape index: {}]   ;;  %s2440_s4 = inlined_call_operand.vmem [shape: f32[2,8,8], index: 4, kind: input, shape index: {}]   ;;  %s2441_s5 = inlined_call_operand.vmem [shape: f32[2,8,32], index: 5, kind: input, shape index: {}, may-alias: {5,15}]   ;;  %s2442_s6 = inlined_call_operand.vmem [shape: f32[2,8,32], index: 6, kind: input, shape index: {}, may-alias: {6,16}]   ;;  %s2443_s7 = inlined_call_operand.vmem [shape: bf16[32,128], index: 7, kind: input, shape index: {}]   ;;  %s2444_s8 = inlined_call_operand.vmem [shape: bf16[64,32], index: 8, kind: input, shape index: {}]   ;;  %s2445_s9 = inlined_call_operand.vmem [shape: bf16[32,64], index: 9, kind: input, shape index: {}]   ;;  %s2446_s10 = inlined_call_operand.vmem [shape: bf16[32,64], index: 10, kind: input, shape index: {}]   ;;  %s2447_s11 = inlined_call_operand.vmem [shape: bf16[64,32], index: 11, kind: input, shape index: {}]   ;;  %s2448_s12 = inlined_call_operand.vmem [shape: f32[1,32], index: 12, kind: input, shape index: {}]   ;;  %s2449_s13 = inlined_call_operand.vmem [shape: f32[1,32], index: 13, kind: input, shape index: {}]   ;;  %s2450_s14 = inlined_call_operand.hbm [shape: f32[2,8,32], index: 14, kind: output, shape index: {0}]   ;;  %s2451_s15 = inlined_call_operand.vmem [shape: f32[2,8,32], index: 15, kind: output, shape index: {1}, may-alias: {5,15}]   ;;  %s2452_s16 = inlined_call_operand.vmem [shape: f32[2,8,32], index: 16, kind: output, shape index: {2}, may-alias: {6,16}]  }
   0x1   :  { %2462 = sst [smem:[#allocation10_spill]] %s2436_s0 }
   0x2   :  { %2463 = sst [smem:[#allocation11_spill]] %s2437_s1 }
   0x3   :  { %2464 = sst [smem:[#allocation12_spill]] %s2438_s2 }
   0x4   :  { %2465 = sst [smem:[#allocation13_spill]] %s2439_s3 }
   0x5   :  { %2466 = sst [smem:[#allocation14_spill]] %s2442_s6 }
   0x6   :  { %2467 = sst [smem:[#allocation15_spill]] %s2443_s7 }
   0x7   :  { %2468 = sst [smem:[#allocation16_spill]] %s2448_s12 }
   0x8   :  { %22 = vsyncpa [#allocation4], 0 }
   0x9   :  { %23 = vsyncpa [#allocation3], 0 }
   0xa   :  { %25 = vsyncpa [#allocation3 + $0x1], 0  ;;  %s2059_s21 = smov 0   ;;  %s2061_s22 = smov 0  }
   0xb   :  { %s2063_s23 = smov 0   ;;  %s2065_s24 = smov 0  }
   0xc LB: > { %2469 = sst [smem:[#allocation8_spill]] %s1954_s23  ;;  %s2080_s25 = sadd.s32 4294967295, %s1958_s24   ;;  %s1958_s24 = sphi %s2065_s24, %s2494_s24   ;;  %s1954_s23 = sphi %s2063_s23, %s2491_s23   ;;  %s1950_s22 = sphi %s2061_s22, %s2493_s22   ;;  %s1946_s21 = sphi %s2059_s21, %s2492_s21  }
   0xd   : > { %s1633_s26 = sadd.s32 4294967294, %s1958_s24   ;;  %s2084_s27 = sadd.s32 1, %s1958_s24  }
   0xe   : > { %s352_s28 = sadd.s32 1, %s1954_s23  ;;  %s349_s29 = ssub.s32 %s1958_s24, %s2084_s27 }
   0xf   : > { %p362_p0 = scmp.ne.s32.totalorder %s1954_s23, %s1950_s22  ;;  %p350_p1 = scmp.eq.s32.totalorder %s349_s29, 0 }
  0x10   : > { %p363_p2 = scmp.eq.s32.totalorder %s2080_s25, 1  ;;  %p368_p3 = scmp.ne.s32.totalorder %s1950_s22, %s1946_s21 }
  0x11   : > { %p369_p4 = scmp.eq.s32.totalorder %s1633_s26, 1  ;;  %p1634_p7 = scmp.ge.s32.totalorder %s1958_s24, 1 }
  0x12   : > { %s2095_s30 = scalar_select %p350_p1, %s1954_s23, %s352_s28  }
  0x13   : > { %p2097_p5 = por %p363_p2, %p362_p0  ;;  %p2101_p6 = por %p369_p4, %p368_p3 }
  0x14   : > { %2470 = sst [smem:[#allocation9_spill]] %s2095_s30  ;;  %p428_p8 = scmp.lt.s32.totalorder %s1958_s24, 3 }
  0x15   : > { %p1793_p9 = scmp.eq.s32.totalorder %s2080_s25, 0  ;;  %s2474_s3 = sld [smem:[#allocation13_spill]] }
  0x16   : > { %p2108_p10 = pnand %p1634_p7, %p428_p8 }
  0x18   : > { %p1785_p11 = pneg %p2108_p10 }
  0x1a   : > { %p1786_p12 = pnand %p1793_p9, %p1785_p11 }
  0x1b   : > { %s447_s26 = sshll.u32 %s2474_s3, 4  ;;  %s448_s26 = int_to_ptr.vmem [resolvable:$true] %s447_s26 }
  0x1c   : > { %s1877_s28 = scalar_lea.vmem %s448_s26, 16  ;;  %p1879_p0 = pneg %p1786_p12 }
  0x1d   : > { %p1878_p13 = scmp.ne.s32.totalorder %s448_s26, %s1877_s28  ;;  %p1885_p3 = scmp.lt.s32.totalorder %s448_s26, %s448_s26 }
  0x1e   : > { %p1886_p4 = scmp.lt.s32.totalorder %s1877_s28, %s1877_s28 }
  0x1f   : > { %p1880_p1 = pnand %p1879_p0, %p1878_p13 }
  0x20   : > { %p1887_p7 = por %p1886_p4, %p1885_p3 }
  0x21   : > { %p1881_p2 = pneg %p1880_p1 }
  0x23   : > { %p1888_p8 = pnand %p1887_p7, %p1881_p2 }
  0x25   : > { %1891 = shalt.err (!%p1888_p8)
}
  0x26   : > { %s1960_s29 = smov [#allocation2]   ;;  %509 = sbr.rel (%p2108_p10) target bundleno = 2623 (0xa3f), region = 76 }
  0x27   : > { %1788 = dma.vmem_to_smem (!%p1786_p12), %s448_s26, 16, %s1960_s29, [#allocation4]  }
  0x2d   : > { %1937 = dma.done.wait (%p1793_p9), [#allocation4], 16  }
  0x2e   : > { %1939 = vsyncadd (%p1793_p9), [#allocation4], 4294967280 }
  0x2f   : > { %515 = sfence }
  0x30   : > { %p579_p11 = scmp.lt.s32.totalorder %s2080_s25, 1  ;;  %s2475_s26 = sld [smem:[#allocation10_spill]]  ;;  %vm606_vm0 = vcmask 261120   ;;  %v1961_v4 = vmov 0.0   ;;  %vm1962_vm1 = vmmov 0   ;;  %v618_v10 = vlaneseq }
  0x31   : > { %s2476_s7 = sld [smem:[#allocation15_spill]]  ;;  %1707 = vmatprep.subr.bf16.mxu0 %v1961_v4  ;;  %1711 = vmatprep.mubr.msk.bf16.mxu0 %vm1962_vm1, %v1961_v4  ;;  %s2477_s2 = sld [smem:[#allocation12_spill]]  ;;  %vm757_vm2 = vcmask 64512   ;;  %vm759_vm3 = vcmask 130048   ;;  %vm761_vm4 = vcmask 195584   ;;  %vm764_vm5 = vcmask 326656  }
  0x32   : > { %s580_s19 = scalar_select %p579_p11, %s2080_s25, 1  ;;  %1715 = vmatprep.subr.bf16.mxu1 %v1961_v4  ;;  %1717 = vmatprep.mubr.msk.bf16.mxu1 %vm1962_vm1, %v1961_v4  ;;  %v2162_v12 = vshrl.u32 %v618_v10, 7  ;;  %vm766_vm6 = vcmask 392192   ;;  %vm768_vm7 = vcmask 457728  }
  0x33   : > { %s2478_s1 = sld [smem:[#allocation11_spill]]  ;;  %s2459_s18 = smov 32  }
  0x34   : > { %s2127_s20 = sshll.u32 %s580_s19, 3  ;;  %s2457_s3 = smov 80   ;;  %v2168_v15 = vsub.s32 0, %v2162_v12  ;;  %v859_v10 = vsub.s32 5, %v2162_v12 }
  0x35   : > { %s2479_s12 = sld [smem:[#allocation16_spill]]  ;;  %s2455_s28 = smov 112  }
  0x36   : > { %s582_s29 = scalar_lea.vmem %s2475_s26, %s2127_s20  ;;  %s2453_s26 = smov 96  }
  0x37   : > { %v2133_v0 = vld [vmem:[%s582_s29] sm:$0xff]  ;;  %v1842_v5 = vld [vmem:[%s2476_s7 + $0x8] sm:$0xff]   ;;  %s1967_s29 = smov 64   ;;  %s1968_s19 = smov 8  }
  0x38   : > { %v605_v1 = vmul.f32 %v2133_v0, %v2133_v0  ;;  %v1841_v3 = vld [vmem:[%s2476_s7] sm:$0xff]   ;;  %s2460_s30 = smov 16   ;;  %s2480_s6 = sld [smem:[#allocation14_spill]] }
  0x39   : > { %1708 = vmatpush3.bf16.msra.mxu0 %v1841_v3  ;;  %v685_v6 = vld [vmem:[%s2477_s2] sm:$0xff]  ;;  %s2481_s2 = smov 80   ;;  %s2213_s7 = sld [smem:[#allocation2 + $0x5]] }
  0x3a   : > { %v607_v2 = vsel %vm606_vm0, %v605_v1, 0.0  ;;  %1709 = vmatprep.subr.bf16.mxu0 %v1961_v4  ;;  %v684_v7 = vld [vmem:[%s2478_s1] sm:$0xff]  ;;  %688 = vrot.lane.b32.xlu1 %v685_v6, %s2459_s18  ;;  %s2219_s23 = sld [smem:[#allocation2 + $0x7]] }
  0x3b   : > { %608 = vadd.xlane.f32.xlu0 %v607_v2  ;;  %v615_v13 = vld [vmem:[%s2479_s12] sm:$0x1]  ;;  %s2216_s12 = sld [smem:[#allocation2 + $0x6]] }
  0x3c   : > { %v616_v14 = vadd.f32 1.0, %v615_v13  ;;  %v829_v13 = vsub.s32 2, %v2162_v12 }
  0x3d   : > { %1710 = vmatpush3.bf16.msra.mxu0 %v1842_v5 }
  0x3e   : > { %1721 = vmatprep.subr.bf16.mxu0 %v1961_v4  ;;  %712 = vrot.lane.b32.xlu1 %v685_v6, %s2457_s3  ;;  %v621_v16 = vrot.slane %v616_v14, %v2168_v15  ;;  %s594_s1 = scalar_lea.vmem %s2480_s6, %s2127_s20  ;;  %s590_s6 = scalar_lea.vmem %s2441_s5, %s2127_s20 }
  0x3f   : > { %v794_v47 = vld [vmem:[%s594_s1] sm:$0xff]  ;;  %s802_s1 = sld [smem:[#allocation2]] }
  0x42   : > { %725 = vrot.lane.b32.xlu1 %v684_v7, %s2457_s3  ;;  %s2199_s3 = sld [smem:[#allocation2 + $0x1]] }
  0x51   : > { %699 = vrot.lane.b32.xlu0 %v684_v7, %s2459_s18 }
  0xac   : > { %v689_v21 = vpop.permute.xlu1 %688 }
  0xb0   : > { %v713_v23 = vpop.permute.xlu1 %712 }
  0xb4   : > { %v726_v31 = vpop.permute.xlu1 %725 }
  0xc8   : > { %v609_v8 = vpop.xlane.xlu0 %608 }
  0xc9   : > { %v611_v9 = vmul.f32 0.03125, %v609_v8  ;;  %v803_v8 = vstv %s802_s1  ;;  %s586_s1 = scalar_lea.vmem %s2440_s4, %s2127_s20 }
  0xca   : > { %vm804_vm8 = vcmp.eq.s32.totalorder %v2162_v12, %v803_v8 }
  0xcb   : > { %v612_v11 = vadd.f32 1e-06, %v611_v9  ;;  %v819_v9 = vsub.s32 1, %v2162_v12 }
  0xcc   : > { %v700_v22 = vpop.permute.xlu0 %699 }
  0xcd   : > { %1855 = vrsqrt.f32 %v612_v11  ;;  %v813_v11 = vstv %s2199_s3  ;;  %s602_s3 = scalar_lea.vmem %s2452_s16, %s2127_s20 }
  0xce   : > { %vm2235_vm9 = vcmp.eq.s32.totalorder %v2162_v12, %v813_v11 }
  0xd7   : > { %v1856_v17 = vpop.eup %1855 }
  0xd8   : > { %v614_v18 = vmul.f32 %v1856_v17, %v2133_v0 }
  0xda   : > { %v623_v19 = vmul.f32 %v621_v16, %v614_v18  ;;  %v839_v18 = vsub.s32 3, %v2162_v12 }
  0xdc   : > { %v624_v20 = vpack.c.bf16 %v623_v19, %v623_v19  ;;  %v849_v19 = vsub.s32 4, %v2162_v12 }
  0xde   : > { %1712 = vmatmul.mubr.msk.bf16.vlgmr.msra.gmra.mrb[0].mxu0 %vm606_vm0, %v624_v20 }
  0xdf   : > { %1723 = vmatprep.mubr.msk.bf16.mxu0 %vm1962_vm1, %v1961_v4 }
 0x1b1   : > { %v678_v24 = vpop.f32.mrb[0].mxu0 }
 0x1b2   : > { %v702_v25 = vmul.f32 %v700_v22, %v678_v24  ;;  %v1713_v26 = vpop.f32.mrb[1].mxu0  ;;  %v715_v27 = vmul.f32 %v713_v23, %v678_v24  ;;  %v691_v30 = vmul.f32 %v689_v21, %v678_v24  ;;  %v728_v32 = vmul.f32 %v726_v31, %v678_v24 }
 0x1b3   : > { %v681_v28 = vpop.f32.mrb[2].mxu0  ;;  %v697_v33 = vmul.f32 %v685_v6, %v678_v24  ;;  %v686_v36 = vmul.f32 %v684_v7, %v678_v24 }
 0x1b4   : > { %717 = vrot.lane.b32.xlu0 %v715_v27, %s2455_s28  ;;  %v1714_v29 = vpop.f32.mrb[3].mxu0  ;;  %704 = vrot.lane.b32.xlu1 %v702_v25, %s2453_s26  ;;  %v869_v28 = vsub.s32 6, %v2162_v12 }
 0x1b5   : > { %v853_v29 = vstv %s2213_s7 }
 0x1b6   : > { %vm854_vm13 = vcmp.eq.s32.totalorder %v2162_v12, %v853_v29 }
 0x1b8   : > { %693 = vrot.lane.b32.xlu1 %v691_v30, %s2453_s26  ;;  %s1970_s26 = smov 24   ;;  %v879_v30 = vsub.s32 7, %v2162_v12 }
 0x1bc   : > { %708 = vrot.lane.b32.xlu1 %v684_v7, %s1967_s29  ;;  %v793_v7 = vld [vmem:[%s590_s6] sm:$0xff]  ;;  %s1677_s6 = sshll.u32 %s2080_s25, 7 }
 0x1c0   : > { %721 = vrot.lane.b32.xlu1 %v685_v6, %s1967_s29 }
 0x1c4   : > { %730 = vrot.lane.b32.xlu1 %v728_v32, %s2455_s28  ;;  %s1971_s28 = smov 72  }
 0x226   : > { %v705_v34 = vpop.permute.xlu1 %704  ;;  %v718_v43 = vpop.permute.xlu0 %717 }
 0x227   : > { %v707_v35 = vadd.f32 %v705_v34, %v697_v33  ;;  %v863_v33 = vstv %s2216_s12  ;;  %s598_s12 = scalar_lea.vmem %s2451_s15, %s2127_s20 }
 0x228   : > { %vm864_vm14 = vcmp.eq.s32.totalorder %v2162_v12, %v863_v33 }
 0x229   : > { %735 = vrot.lane.b32.xlu0 %v707_v35, %s1968_s19 }
 0x22a   : > { %v694_v37 = vpop.permute.xlu1 %693 }
 0x22b   : > { %v696_v38 = vsub.f32 %v686_v36, %v694_v37  ;;  %v873_v36 = vstv %s2219_s23  ;;  %s2487_s23 = smov 96  }
 0x22c   : > { %vm874_vm15 = vcmp.eq.s32.totalorder %v2162_v12, %v873_v36 }
 0x22d   : > { %742 = vrot.lane.b32.xlu0 %v707_v35, %s2460_s30  ;;  %739 = vrot.lane.b32.xlu1 %v696_v38, %s1968_s19  ;;  %s2207_s19 = sld [smem:[#allocation2 + $0x4]] }
 0x22e   : > { %v709_v39 = vpop.permute.xlu1 %708 }
 0x22f   : > { %v711_v41 = vmul.f32 %v709_v39, %v678_v24 }
 0x231   : > { %748 = vrot.lane.b32.xlu0 %v707_v35, %s1970_s26  ;;  %745 = vrot.lane.b32.xlu1 %v696_v38, %s2460_s30  ;;  %v720_v45 = vsub.f32 %v711_v41, %v718_v43  ;;  %s1972_s30 = smov 48  }
 0x232   : > { %v722_v40 = vpop.permute.xlu1 %721 }
 0x233   : > { %v724_v42 = vmul.f32 %v722_v40, %v678_v24  ;;  %v843_v27 = vstv %s2207_s19 }
 0x234   : > { %vm844_vm12 = vcmp.eq.s32.totalorder %v2162_v12, %v843_v27 }
 0x235   : > { %754 = vrot.lane.b32.xlu0 %v707_v35, %s2459_s18  ;;  %751 = vrot.lane.b32.xlu1 %v696_v38, %s1970_s26  ;;  %s2482_s26 = smov 112  }
 0x236   : > { %v731_v44 = vpop.permute.xlu1 %730 }
 0x237   : > { %v733_v46 = vadd.f32 %v731_v44, %v724_v42 }
 0x239   : > { %776 = vrot.lane.b32.xlu0 %v733_v46, %s1971_s28  ;;  %772 = vrot.lane.b32.xlu1 %v720_v45, %s1967_s29 }
 0x23d   : > { %782 = vrot.lane.b32.xlu0 %v733_v46, %s2481_s2  ;;  %779 = vrot.lane.b32.xlu1 %v720_v45, %s1971_s28  ;;  %s2201_s28 = sld [smem:[#allocation2 + $0x2]] }
 0x241   : > { %789 = vrot.lane.b32.xlu1 %v678_v24, %s1967_s29  ;;  %796 = vrot.lane.b32.xlu0 %v794_v47, %s2459_s18  ;;  %s2205_s29 = sld [smem:[#allocation2 + $0x3]]  ;;  %s2489_s18 = smov 32  }
 0x243   : > { %v823_v17 = vstv %s2201_s28 }
 0x244   : > { %vm824_vm10 = vcmp.eq.s32.totalorder %v2162_v12, %v823_v17 }
 0x247   : > { %v833_v22 = vstv %s2205_s29  ;;  %s564_s29 = sand.u32 1, %s1950_s22  }
 0x248   : > { %vm2245_vm11 = vcmp.eq.s32.totalorder %v2162_v12, %v833_v22  ;;  %s1639_s19 = sshll.u32 %s564_s29, 3  ;;  %s1451_s25 = scalar_lea.sflag [#allocation3], %s564_s29 }
 0x249   : > { %s566_s7 = scalar_lea.vmem [#allocation5], %s1639_s19 }
 0x29b   : > { %v736_v48 = vpop.permute.xlu0 %735 }
 0x29c   : > { %v758_v49 = vsel %vm757_vm2, %v696_v38, %v736_v48 }
 0x29f   : > { %v740_v50 = vpop.permute.xlu1 %739  ;;  %v743_v51 = vpop.permute.xlu0 %742 }
 0x2a0   : > { %v760_v52 = vsel %vm759_vm3, %v758_v49, %v740_v50 }
 0x2a1   : > { %v762_v53 = vsel %vm761_vm4, %v760_v52, %v743_v51 }
 0x2a3   : > { %v746_v54 = vpop.permute.xlu1 %745  ;;  %v749_v55 = vpop.permute.xlu0 %748 }
 0x2a4   : > { %v763_v56 = vsel %vm606_vm0, %v762_v53, %v746_v54  ;;  %v888_v54 = vld [vmem:[%s586_s1] sm:$0xff]  ;;  %s2393_s1 = scalar_lea.hbm %s2450_s14, %s1677_s6 }
 0x2a5   : > { %v765_v57 = vsel %vm764_vm5, %v763_v56, %v749_v55 }
 0x2a7   : > { %v752_v58 = vpop.permute.xlu1 %751  ;;  %v755_v59 = vpop.permute.xlu0 %754 }
 0x2a8   : > { %v767_v60 = vsel %vm766_vm6, %v765_v57, %v752_v58 }
 0x2a9   : > { %v769_v61 = vsel %vm768_vm7, %v767_v60, %v755_v59 }
 0x2aa   : > { %v2197_v62 = vmul.f32 0.25, %v769_v61 }
 0x2ab   : > { %v773_v63 = vpop.permute.xlu1 %772  ;;  %v777_v1 = vpop.permute.xlu0 %776 }
 0x2ac   : > { %891 = vrot.lane.b32.xlu1 %v2197_v62, %s2482_s26  ;;  %v785_v2 = vsel %vm757_vm2, %v773_v63, %v777_v1 }
 0x2af   : > { %v780_v3 = vpop.permute.xlu1 %779  ;;  %v783_v5 = vpop.permute.xlu0 %782 }
 0x2b0   : > { %v786_v6 = vsel %vm759_vm3, %v785_v2, %v780_v3 }
 0x2b1   : > { %v787_v14 = vsel %vm761_vm4, %v786_v6, %v783_v5  ;;  %vm971_vm4 = vcmask 1043456  }
 0x2b3   : > { %v790_v16 = vpop.permute.xlu1 %789  ;;  %v797_v20 = vpop.permute.xlu0 %796 }
 0x2b4   : > { %v792_v21 = vsel %vm606_vm0, %v787_v14, %v790_v16  ;;  %v799_v23 = vsel %vm606_vm0, %v793_v7, %v797_v20 }
 0x2b5   : > { %v810_v24 = vrot.slane %v792_v21, %v2168_v15  ;;  %v820_v26 = vrot.slane %v792_v21, %v819_v9  ;;  %v830_v31 = vrot.slane %v792_v21, %v829_v13  ;;  %v840_v35 = vrot.slane %v792_v21, %v839_v18 }
 0x2b6   : > { %v850_v38 = vrot.slane %v792_v21, %v849_v19  ;;  %v860_v40 = vrot.slane %v792_v21, %v859_v10  ;;  %v870_v42 = vrot.slane %v792_v21, %v869_v28  ;;  %v880_v44 = vrot.slane %v792_v21, %v879_v30 }
 0x2b7   : > { %v811_v34 = vsel %vm804_vm8, %v810_v24, %v799_v23 }
 0x2b8   : > { %v821_v37 = vsel %vm2235_vm9, %v820_v26, %v811_v34 }
 0x2b9   : > { %v831_v39 = vsel %vm824_vm10, %v830_v31, %v821_v37 }
 0x2ba   : > { %v841_v41 = vsel %vm2245_vm11, %v840_v35, %v831_v39 }
 0x2bb   : > { %v851_v43 = vsel %vm844_vm12, %v850_v38, %v841_v41 }
 0x2bc   : > { %v861_v45 = vsel %vm854_vm13, %v860_v40, %v851_v43 }
 0x2bd   : > { %v871_v46 = vsel %vm864_vm14, %v870_v42, %v861_v45 }
 0x2be   : > { %v2263_v47 = vsel %vm874_vm15, %v880_v44, %v871_v46 }
 0x2bf   : > { %882 = vst.msk [vmem:[%s598_s12] sm:$0xff] %vm606_vm0, %v2263_v47  ;;  %v2269_v48 = vpack.c.bf16 %v2263_v47, %v2263_v47  ;;  %s2488_s12 = smov 16  }
 0x2c1   : > { %1019 = vrot.lane.b32.xlu0 %v2269_v48, %s2482_s26  ;;  %v899_v12 = vsel %vm759_vm3, %v2269_v48, 0 }
 0x2c2   : > { %1716 = vmatpush3.bf16.xpose.msra.mxu1 %v899_v12 }
 0x2c3   : > { %1727 = vmatprep.subr.bf16.mxu1 %v1961_v4 }
 0x31e   : > { %v892_v49 = vpop.permute.xlu1 %891 }
 0x31f   : > { %v894_v50 = vpack.c.bf16 %v892_v49, %v2197_v62  ;;  %v1843_v49 = vld [vmem:[%s2444_s8] sm:$0xff]  }
 0x321   : > { %1017 = vrot.lane.b32.xlu1 %v894_v50, %s2487_s23  ;;  %1718 = vmatmul.mubr.msk.bf16.vlgmr.msra.gmra.mrb[0].mxu1 %vm759_vm3, %v894_v50  ;;  %v1844_v50 = vld [vmem:[%s2444_s8 + $0x8] sm:$0xff]  }
 0x322   : > { %1729 = vmatprep.mubr.msk.bf16.mxu1 %vm1962_vm1, %v1961_v4 }
 0x333   : > { %v1020_v51 = vpop.permute.xlu0 %1019 }
 0x334   : > { %v1025_v52 = vsel %vm759_vm3, %v1020_v51, 0  ;;  %v1845_v51 = vld [vmem:[%s2444_s8 + $0x10] sm:$0xff]  }
 0x335   : > { %1728 = vmatpush3.bf16.xpose.msra.mxu1 %v1025_v52 }
 0x336   : > { %1739 = vmatprep.subr.bf16.mxu1 %v1961_v4 }
 0x393   : > { %v1018_v53 = vpop.permute.xlu1 %1017 }
 0x394   : > { %1730 = vmatmul.mubr.msk.bf16.vlgmr.msra.gmra.mrb[4].mxu1 %vm759_vm3, %v1018_v53  ;;  %v1846_v53 = vld [vmem:[%s2444_s8 + $0x18] sm:$0xff]  }
 0x395   : > { %1747 = vmatprep.mubr.msk.bf16.mxu1 %vm1962_vm1, %v1961_v4  ;;  %1740 = vmatpush3.bf16.msra.mxu1 %v1843_v49 }
 0x396   : > { %1741 = vmatprep.subr.bf16.mxu1 %v1961_v4 }
 0x399   : > { %1742 = vmatpush3.bf16.msra.mxu1 %v1844_v50 }
 0x39a   : > { %1743 = vmatprep.subr.bf16.mxu1 %v1961_v4 }
 0x39d   : > { %1744 = vmatpush3.bf16.msra.mxu1 %v1845_v51 }
 0x39e   : > { %1745 = vmatprep.subr.bf16.mxu1 %v1961_v4 }
 0x3a1   : > { %1746 = vmatpush3.bf16.msra.mxu1 %v1846_v53 }
 0x3a2   : > { %1767 = vmatprep.subr.bf16.mxu1 %v1961_v4 }
 0x3f4   : > { %v935_v55 = vpop.f32.mrb[0].mxu1 }
 0x3f5   : > { %v936_v56 = vadd.f32 %v935_v55, %v888_v54  ;;  %v1719_v57 = vpop.f32.mrb[1].mxu1 }
 0x3f6   : > { %v938_v58 = vpop.f32.mrb[2].mxu1 }
 0x3f7   : > { %v939_v59 = vadd.f32 %v938_v58, %v888_v54  ;;  %v1720_v60 = vpop.f32.mrb[3].mxu1  ;;  %v942_v61 = vsel %vm757_vm2, %v936_v56, -inf }
 0x3f8   : > { %943 = vmax.xlane.f32.xlu0 %v942_v61 }
 0x3f9   : > { %v945_v62 = vsel %vm757_vm2, %v939_v59, -inf }
 0x3fa   : > { %946 = vmax.xlane.f32.xlu1 %v945_v62 }
 0x467   : > { %v1061_v63 = vpop.f32.mrb[4].mxu1 }
 0x468   : > { %v1062_v1 = vadd.f32 %v1061_v63, %v888_v54  ;;  %v1731_v2 = vpop.f32.mrb[5].mxu1 }
 0x469   : > { %v1064_v3 = vpop.f32.mrb[6].mxu1 }
 0x46a   : > { %v1065_v5 = vadd.f32 %v1064_v3, %v888_v54  ;;  %v1732_v6 = vpop.f32.mrb[7].mxu1  ;;  %v1068_v7 = vsel %vm757_vm2, %v1062_v1, -inf }
 0x46b   : > { %1069 = vmax.xlane.f32.xlu0 %v1068_v7 }
 0x46c   : > { %v1071_v8 = vsel %vm757_vm2, %v1065_v5, -inf }
 0x46f   : > { %1072 = vmax.xlane.f32.xlu0 %v1071_v8 }
 0x485   : > { %v944_v9 = vpop.xlane.xlu0 %943 }
 0x486   : > { %v948_v10 = vsub.f32 %v936_v56, %v944_v9 }
 0x487   : > { %v947_v11 = vpop.xlane.xlu1 %946 }
 0x488   : > { %v950_v13 = vmul.f32 1.442695, %v948_v10  ;;  %v949_v14 = vsub.f32 %v939_v59, %v947_v11 }
 0x48a   : > { %1857 = vpow2.f32 %v950_v13  ;;  %v952_v16 = vmul.f32 1.442695, %v949_v14  ;;  %v1847_v14 = vld [vmem:[%s2445_s9] sm:$0xff]  }
 0x48c   : > { %1859 = vpow2.f32 %v952_v16  ;;  %v1848_v16 = vld [vmem:[%s2445_s9 + $0x8] sm:$0xff]  }
 0x494   : > { %v1858_v17 = vpop.eup %1857 }
 0x495   : > { %v954_v18 = vsel %vm757_vm2, %v1858_v17, 0.0 }
 0x496   : > { %v1860_v19 = vpop.eup %1859  ;;  %955 = vadd.xlane.f32.xlu1 %v954_v18 }
 0x497   : > { %v957_v20 = vsel %vm757_vm2, %v1860_v19, 0.0 }
 0x498   : > { %958 = vadd.xlane.f32.xlu0 %v957_v20 }
 0x4f8   : > { %v1070_v21 = vpop.xlane.xlu0 %1069 }
 0x4f9   : > { %v1074_v22 = vsub.f32 %v1062_v1, %v1070_v21 }
 0x4fb   : > { %v1076_v23 = vmul.f32 1.442695, %v1074_v22 }
 0x4fc   : > { %v1073_v24 = vpop.xlane.xlu0 %1072 }
 0x4fd   : > { %1861 = vpow2.f32 %v1076_v23  ;;  %v1075_v25 = vsub.f32 %v1065_v5, %v1073_v24 }
 0x4ff   : > { %v1078_v26 = vmul.f32 1.442695, %v1075_v25  ;;  %v1849_v25 = vld [vmem:[%s2446_s10] sm:$0xff]  }
 0x501   : > { %1863 = vpow2.f32 %v1078_v26 }
 0x507   : > { %v1862_v27 = vpop.eup %1861 }
 0x508   : > { %v1080_v28 = vsel %vm757_vm2, %v1862_v27, 0.0 }
 0x509   : > { %1081 = vadd.xlane.f32.xlu1 %v1080_v28  ;;  %v1852_v28 = vld [vmem:[%s2447_s11 + $0x8] sm:$0xff]  }
 0x50b   : > { %v1864_v29 = vpop.eup %1863 }
 0x50c   : > { %v1083_v30 = vsel %vm757_vm2, %v1864_v29, 0.0 }
 0x50d   : > { %1084 = vadd.xlane.f32.xlu0 %v1083_v30  ;;  %v1854_v30 = vld [vmem:[%s2447_s11 + $0x18] sm:$0xff]  }
 0x51a   : > { %966 = vrot.lane.b32.xlu1 %v2269_v48, %s2487_s23 }
 0x523   : > { %1091 = vrot.lane.b32.xlu0 %v2269_v48, %s2481_s2  ;;  %v956_v32 = vpop.xlane.xlu1 %955 }
 0x525   : > { %v959_v31 = vpop.xlane.xlu0 %958 }
 0x526   : > { %1865 = vrcp.f32 %v959_v31 }
 0x527   : > { %1867 = vrcp.f32 %v956_v32 }
 0x530   : > { %v1866_v33 = vpop.eup %1865 }
 0x531   : > { %v1868_v35 = vpop.eup %1867  ;;  %v963_v36 = vmul.f32 %v1866_v33, %v1860_v19  ;;  %v1241_v19 = vld [vmem:[%s2449_s13] sm:$0x1] }
 0x532   : > { %v962_v39 = vmul.f32 %v1868_v35, %v1858_v17  ;;  %v1242_v20 = vadd.f32 1.0, %v1241_v19 }
 0x534   : > { %v964_v41 = vpack.c.bf16 %v963_v36, %v962_v39  ;;  %v1247_v21 = vrot.slane %v1242_v20, %v2168_v15  ;;  %v1851_v15 = vld [vmem:[%s2447_s11] sm:$0xff]  }
 0x596   : > { %v1082_v34 = vpop.xlane.xlu1 %1081 }
 0x597   : > { %1869 = vrcp.f32 %v1082_v34 }
 0x59a   : > { %v967_v37 = vpop.permute.xlu1 %966  ;;  %v1085_v38 = vpop.xlane.xlu0 %1084 }
 0x59b   : > { %v973_v40 = vsel %vm971_vm4, %v967_v37, 0  ;;  %1871 = vrcp.f32 %v1085_v38 }
 0x59c   : > { %1722 = vmatpush3.bf16.msra.mxu0 %v973_v40 }
 0x59d   : > { %1733 = vmatprep.subr.bf16.mxu0 %v1961_v4 }
 0x59e   : > { %v1092_v42 = vpop.permute.xlu0 %1091 }
 0x59f   : > { %v1097_v43 = vsel %vm971_vm4, %v1092_v42, 0  ;;  %1724 = vmatmul.mubr.msk.bf16.vlgmr.msra.gmra.mrb[4].mxu0 %vm757_vm2, %v964_v41 }
 0x5a0   : > { %1734 = vmatpush3.bf16.msra.mxu0 %v1097_v43  ;;  %1735 = vmatprep.mubr.msk.bf16.mxu0 %vm1962_vm1, %v1961_v4 }
 0x5a1   : > { %1751 = vmatprep.subr.bf16.mxu0 %v1961_v4  ;;  %v1870_v44 = vpop.eup %1869 }
 0x5a2   : > { %v1088_v46 = vmul.f32 %v1870_v44, %v1862_v27  ;;  %v1850_v27 = vld [vmem:[%s2446_s10 + $0x8] sm:$0xff]  }
 0x5a5   : > { %v1872_v45 = vpop.eup %1871 }
 0x5a6   : > { %v1089_v48 = vmul.f32 %v1872_v45, %v1864_v29  ;;  %v1853_v29 = vld [vmem:[%s2447_s11 + $0x10] sm:$0xff]  }
 0x5a8   : > { %v1090_v12 = vpack.c.bf16 %v1089_v48, %v1088_v46 }
 0x5aa   : > { %1736 = vmatmul.mubr.msk.bf16.vlgmr.msra.gmra.mrb[8].mxu0 %vm757_vm2, %v1090_v12  ;;  %vm1188_vm2 = vcmask 523264  }
 0x5ab   : > { %1755 = vmatprep.mubr.msk.bf16.mxu0 %vm1962_vm1, %v1961_v4  ;;  %1752 = vmatpush3.bf16.msra.mxu0 %v1847_v14 }
 0x5ac   : > { %1753 = vmatprep.subr.bf16.mxu0 %v1961_v4 }
 0x5af   : > { %1754 = vmatpush3.bf16.msra.mxu0 %v1848_v16 }
 0x5b0   : > { %1759 = vmatprep.subr.bf16.mxu0 %v1961_v4 }
 0x672   : > { %v1009_v52 = vpop.f32.mrb[4].mxu0 }
 0x673   : > { %v1725_v54 = vpop.f32.mrb[5].mxu0 }
 0x674   : > { %v1012_v55 = vpop.f32.mrb[6].mxu0 }
 0x675   : > { %1141 = vrot.lane.b32.xlu1 %v1012_v55, %s2488_s12  ;;  %v1726_v56 = vpop.f32.mrb[7].mxu0  ;;  %s1472_s12 = sshll.u32 %s566_s7, 4  ;;  %s2395_s12 = int_to_ptr.vmem [resolvable:$true] %s1472_s12 }
 0x676   : > { %s1892_s2 = scalar_lea.vmem %s2395_s12, 128 }
 0x677   : > { %p1893_p9 = scmp.ne.s32.totalorder %s2395_s12, %s1892_s2 }
 0x679   : > { %p1894_p10 = pnand %p1893_p9, %p2097_p5 }
 0x67b   : > { %p1895_p12 = pneg %p1894_p10 }
 0x67d   : > { %v1133_v57 = vpop.f32.mrb[8].mxu0 }
 0x67e   : > { %1145 = vrot.lane.b32.xlu1 %v1133_v57, %s2489_s18  ;;  %v1737_v58 = vpop.f32.mrb[9].mxu0 }
 0x67f   : > { %v1136_v59 = vpop.f32.mrb[10].mxu0 }
 0x680   : > { %1149 = vrot.lane.b32.xlu0 %v1136_v59, %s1972_s30  ;;  %v1738_v60 = vpop.f32.mrb[11].mxu0 }
 0x684   : > { %884 = vrot.lane.b32.xlu0 %v2263_v47, %s2487_s23 }
 0x6e7   : > { %v1142_v61 = vpop.permute.xlu1 %1141 }
 0x6e8   : > { %v1152_v62 = vsel %vm759_vm3, %v1009_v52, %v1142_v61 }
 0x6f0   : > { %v1146_v63 = vpop.permute.xlu1 %1145 }
 0x6f1   : > { %v1153_v1 = vsel %vm606_vm0, %v1152_v62, %v1146_v63 }
 0x6f2   : > { %v1150_v2 = vpop.permute.xlu0 %1149 }
 0x6f3   : > { %v1154_v3 = vsel %vm766_vm6, %v1153_v1, %v1150_v2 }
 0x6f4   : > { %v1155_v5 = vpack.c.bf16 %v1154_v3, %v1154_v3 }
 0x6f6   : > { %1748 = vmatmul.mubr.msk.bf16.vlgmr.msra.gmra.mrb[8].mxu1 %vm1188_vm2, %v1155_v5  ;;  %v885_v6 = vpop.permute.xlu0 %884 }
 0x6f7   : > { %887 = vst.msk [vmem:[%s602_s3] sm:$0xff] %vm606_vm0, %v885_v6  ;;  %1775 = vmatprep.mubr.msk.bf16.mxu1 %vm1962_vm1, %v1961_v4  ;;  %1768 = vmatpush3.bf16.msra.mxu1 %v1851_v15  ;;  %s1973_s3 = smov [#allocation5]  }
 0x6f8   : > { %1769 = vmatprep.subr.bf16.mxu1 %v1961_v4  ;;  %s1896_s20 = sshll.u32 %s1973_s3, 4  ;;  %s1897_s20 = int_to_ptr.vmem [resolvable:$false] %s1896_s20 }
 0x6f9   : > { %s1898_s23 = scalar_lea.vmem %s1897_s20, 256  ;;  %p1899_p13 = scmp.lt.s32.totalorder %s2395_s12, %s1897_s20 }
 0x6fa   : > { %p1900_p0 = scmp.lt.s32.totalorder %s1898_s23, %s1892_s2 }
 0x6fb   : > { %1770 = vmatpush3.bf16.msra.mxu1 %v1852_v28 }
 0x6fc   : > { %1771 = vmatprep.subr.bf16.mxu1 %v1961_v4  ;;  %p1901_p1 = por %p1900_p0, %p1899_p13 }
 0x6fe   : > { %p1902_p2 = pnand %p1901_p1, %p1895_p12 }
 0x6ff   : > { %1772 = vmatpush3.bf16.msra.mxu1 %v1853_v29 }
 0x700   : > { %1773 = vmatprep.subr.bf16.mxu1 %v1961_v4 }
 0x703   : > { %1774 = vmatpush3.bf16.msra.mxu1 %v1854_v30 }
 0x7c9   : > { %v1226_v47 = vpop.f32.mrb[8].mxu1 }
 0x7ca   : > { %v2342_v7 = vadd.f32 %v1226_v47, %v2133_v0  ;;  %v1749_v8 = vpop.f32.mrb[9].mxu1 }
 0x7cb   : > { %v1229_v9 = vpop.f32.mrb[10].mxu1 }
 0x7cc   : > { %v1750_v10 = vpop.f32.mrb[11].mxu1  ;;  %v1233_v11 = vmul.f32 %v2342_v7, %v2342_v7 }
 0x7ce   : > { %v1234_v13 = vsel %vm606_vm0, %v1233_v11, 0.0 }
 0x7cf   : > { %1235 = vadd.xlane.f32.xlu1 %v1234_v13 }
 0x85c   : > { %v1236_v0 = vpop.xlane.xlu1 %1235 }
 0x85d   : > { %v1237_v17 = vmul.f32 0.03125, %v1236_v0 }
 0x85f   : > { %v1238_v18 = vadd.f32 1e-06, %v1237_v17 }
 0x861   : > { %1873 = vrsqrt.f32 %v1238_v18 }
 0x86b   : > { %v1874_v22 = vpop.eup %1873 }
 0x86c   : > { %v1240_v23 = vmul.f32 %v1874_v22, %v2342_v7 }
 0x86e   : > { %v1249_v24 = vmul.f32 %v1247_v21, %v1240_v23 }
 0x870   : > { %v1250_v26 = vpack.c.bf16 %v1249_v24, %v1249_v24 }
 0x872   : > { %1756 = vmatmul.mubr.msk.bf16.vlgmr.msra.gmra.mrb[12].mxu0 %vm606_vm0, %v1250_v26 }
 0x873   : > { %1760 = vmatpush3.bf16.msra.mxu0 %v1849_v25  ;;  %1763 = vmatprep.mubr.msk.bf16.mxu0 %vm1962_vm1, %v1961_v4 }
 0x874   : > { %1761 = vmatprep.subr.bf16.mxu0 %v1961_v4 }
 0x877   : > { %1762 = vmatpush3.bf16.msra.mxu0 %v1850_v27 }
 0x87a   : > { %1764 = vmatmul.mubr.msk.bf16.vlgmr.msra.gmra.mrb[16].mxu0 %vm606_vm0, %v1250_v26 }
 0x945   : > { %v1304_v31 = vpop.f32.mrb[12].mxu0 }
 0x946   : > { %v1311_v32 = vmul.f32 0.70710677, %v1304_v31  ;;  %v1757_v33 = vpop.f32.mrb[13].mxu0  ;;  %v1310_v41 = vmul.f32 0.5, %v1304_v31 }
 0x947   : > { %v1307_v34 = vpop.f32.mrb[14].mxu0 }
 0x948   : > { %1875 = verf.f32 %v1311_v32  ;;  %v1758_v35 = vpop.f32.mrb[15].mxu0 }
 0x94d   : > { %v1365_v36 = vpop.f32.mrb[16].mxu0 }
 0x94e   : > { %v1765_v37 = vpop.f32.mrb[17].mxu0 }
 0x94f   : > { %v1368_v38 = vpop.f32.mrb[18].mxu0 }
 0x950   : > { %v1766_v39 = vpop.f32.mrb[19].mxu0 }
 0x952   : > { %v1876_v40 = vpop.eup %1875 }
 0x953   : > { %v1313_v4 = vadd.f32 1.0, %v1876_v40 }
 0x955   : > { %v1314_v42 = vmul.f32 %v1313_v4, %v1310_v41 }
 0x957   : > { %v1371_v43 = vmul.f32 %v1365_v36, %v1314_v42 }
 0x959   : > { %v1372_v44 = vpack.c.bf16 %v1371_v43, %v1371_v43 }
 0x95b   : > { %1776 = vmatmul.mubr.msk.bf16.vlgmr.msra.gmra.mrb[12].mxu1 %vm1188_vm2, %v1372_v44 }
 0xa2e   : > { %v1442_v45 = vpop.f32.mrb[12].mxu1 }
 0xa2f   : > { %v1448_v46 = vadd.f32 %v1442_v45, %v2342_v7  ;;  %v1777_v48 = vpop.f32.mrb[13].mxu1 }
 0xa30   : > { %v1445_v12 = vpop.f32.mrb[14].mxu1 }
 0xa31   : > { %v1778_v49 = vpop.f32.mrb[15].mxu1  ;;  %1449 = vst.msk [vmem:[%s566_s7] sm:$0xff] %vm606_vm0, %v1448_v46 }
 0xa32   : > { %1905 = shalt.err (!%p1902_p2)
}
 0xa33   : > { %s1906_s28 = scalar_lea.hbm %s2393_s1, 128  ;;  %s1910_s19 = scalar_lea.hbm %s2450_s14, 256 }
 0xa34   : > { %p1907_p3 = scmp.ne.s32.totalorder %s2393_s1, %s1906_s28  ;;  %p1911_p8 = scmp.lt.u32.totalorder %s2393_s1, %s2450_s14 }
 0xa35   : > { %p1912_p11 = scmp.lt.u32.totalorder %s1910_s19, %s1906_s28  ;;  %p1914_p10 = scmp.lt.u32.totalorder %s1906_s28, %s2393_s1 }
 0xa36   : > { %p1908_p4 = pnand %p1907_p3, %p2097_p5 }
 0xa37   : > { %p1913_p9 = por %p1912_p11, %p1911_p8 }
 0xa38   : > { %p1909_p7 = pneg %p1908_p4 }
 0xa39   : > { %p1915_p12 = por %p1914_p10, %p1913_p9 }
 0xa3b   : > { %p1916_p13 = pnand %p1915_p12, %p1909_p7 }
 0xa3d   : > { %1919 = shalt.err (!%p1916_p13)
}
 0xa3e   : > { %1783 = dma.vmem_to_hbm [thread:$0]  (%p2097_p5), %s2395_s12, 128, %s2393_s1, %s1451_s25  }
 0xa3f PF: > { %p1795_p0 = scmp.ge.s32.totalorder %s1958_s24, 2  ;;  %s1490_s18 = sand.u32 1, %s1946_s21  }
 0xa40   : > { %s1491_s30 = scalar_lea.sflag [#allocation3], %s1490_s18 }
 0xa41   : > { %p1790_p1 = pnand %p1795_p0, %p2101_p6 }
 0xa43   : > { %1941 = dma.done.wait (!%p1790_p1), %s1491_s30, 128  }
 0xa44   : > { %1943 = vsyncadd (!%p1790_p1), %s1491_s30, 4294967168  ;;  %s2490_s2 = sld [smem:[#allocation8_spill]]  ;;  %s2491_s23 = sld [smem:[#allocation9_spill]] }
 0xa45   : > { %p28_p2 = scmp.ge.s32.totalorder %s2084_s27, 4   ;;  %s2492_s21 = smov %s1950_s22 }
 0xa46   : > { %s2494_s24 = smov %s2084_s27 }
 0xa47   :  { %30 = sbr.rel (!%p28_p2) target bundleno = 12 (0xc), region = 149 }
 0xa4a   : > { %s2493_s22 = smov %s2490_s2 }
 0xa4e   :  { %1510 = vsyncpa [#allocation3], 1 }
 0xa4f   :  { %1512 = vsyncpa [#allocation3 + $0x1], 1 }
 0xa50   :  { %1513 = vsyncpa [#allocation4], 1 }
 0xa51   :  { %1515 = vsyncpa [#allocation4 + $0x1], 1 }

</bundles_post_ra>
